<compile_context>
chip_gen: v7x
topology: tpu7x:2x2x1
jax: 0.10.0
libtpu: 0.0.40
codegen_flags: <defaults>
</compile_context>

<pallas_src>
import functools

import jax
import jax.numpy as jnp
import numpy as np
from jax import lax
from jax.experimental import pallas as pl
from jax.experimental.pallas import tpu as pltpu

LEAK = 0.2  # leaky-ReLU negative slope used by the synthetic encoder E

_TK_CANDIDATES = (8192, 4096, 2048, 1024, 512, 256, 128)
_STREAM_VMEM_BUDGET = 24 * 1024 * 1024  # double-buffered streaming blocks
_VMEM_LIMIT_CAP = 48 * 1024 * 1024      # stay well under v7x 64 MiB physical


def _round_up(x, m):
    return ((x + m - 1) // m) * m


def _choose_tiling(din, b, l):
    """Pick the Din tile (tk) and the zero-padded Din under a VMEM budget."""
    din128 = _round_up(din, 128)
    for cand in _TK_CANDIDATES:
        tk = min(cand, din128)
        # bf16 We tile + bf16 real/fake x tiles, double buffered.
        per_buf = tk * l * 2 + 2 * b * tk * 2
        if 2 * per_buf > _STREAM_VMEM_BUDGET:
            continue
        din_pad = _round_up(din128, tk)
        # Avoid excessive zero-pad waste for large inputs.
        if din_pad - din128 > max(din // 8, tk // 8):
            continue
        return tk, din_pad
    return 128, din128


def _softplus(x):
    # numerically stable softplus, lowered to VPU + EUP ops
    return jnp.maximum(x, 0.0) + jnp.log1p(jnp.exp(-jnp.abs(x)))


def _alae_disc_loss_kernel(scal_ref, xr_ref, xf_ref, we_ref, be_ref, wd_ref,
                           out_ref, hr_ref, hf_ref, gram_ref,
                           *, leak, gamma, inv_b):
    """Fused E -> D -> adversarial loss + zero-centered gradient penalty.

    Grid axis 0 tiles the Din (contraction) dimension.  Per tile we accumulate
      hr (B, L) += x_real_tile @ We_tile
      hf (B, L) += x_fake_tile @ We_tile
      G  (L, L) += We_tile^T @ We_tile            (no explicit transpose)
    and on the last tile we finish the loss:
      pred  = leaky(alpha*h + be) @ wd + bd
      adv   = mean(softplus(-pred_real) + softplus(pred_fake))
      ||d pred_r/d x_r||^2 = alpha^2 * v G v^T   with  v = leaky'(h_r) * wd
    """
    k = pl.program_id(0)

    @pl.when(k == 0)
    def _():
        hr_ref[...] = jnp.zeros_like(hr_ref)
        hf_ref[...] = jnp.zeros_like(hf_ref)
        gram_ref[...] = jnp.zeros_like(gram_ref)
        out_ref[...] = jnp.zeros_like(out_ref)

    w_tile = we_ref[...]                                # (TK, L) bf16

    hr_ref[...] += jnp.dot(xr_ref[...], w_tile,
                           preferred_element_type=jnp.float32)
    hf_ref[...] += jnp.dot(xf_ref[...], w_tile,
                           preferred_element_type=jnp.float32)
    # Gram accumulation G += We_tile^T @ We_tile expressed as a leading-dim
    # contraction so Mosaic feeds the MXU without materializing w_tile.T.
    gram_ref[...] += lax.dot_general(
        w_tile, w_tile,
        dimension_numbers=(((0,), (0,)), ((), ())),
        preferred_element_type=jnp.float32)

    @pl.when(k == pl.num_programs(0) - 1)
    def _():
        alpha = scal_ref[0]                   # SMEM scalar
        bd = scal_ref[1]                      # SMEM scalar (discriminator bias)
        be = be_ref[...]                      # (1, L) f32
        wd = wd_ref[...]                      # (1, L) f32

        # ---- Encoder E(x, alpha) = leaky_relu(alpha * x @ We + be) ---------
        h_r = alpha * hr_ref[...] + be                        # (B, L)
        h_f = alpha * hf_ref[...] + be                        # (B, L)
        z_r = jnp.where(h_r > 0, h_r, leak * h_r)
        z_f = jnp.where(h_f > 0, h_f, leak * h_f)

        # ---- Discriminator D(z) = z @ wd + bd  ->  (B, 1) logits -----------
        pred_r = jnp.sum(z_r * wd, axis=-1, keepdims=True) + bd
        pred_f = jnp.sum(z_f * wd, axis=-1, keepdims=True) + bd

        # ---- Non-saturating adversarial loss --------------------------------
        adv_sum = (jnp.sum(_softplus(-pred_r), axis=0, keepdims=True) +
                   jnp.sum(_softplus(pred_f), axis=0, keepdims=True))   # (1,1)

        # ---- Zero-centered gradient penalty on real predictions -------------
        # d pred_r[i]/d x_r[i] = alpha * We @ (leaky'(h_r[i]) * wd)
        # => ||grad_i||^2 = alpha^2 * v_i (We^T We) v_i^T,  v_i = leaky'(h_r[i])*wd
        v = jnp.where(h_r > 0, 1.0, leak) * wd                 # (B, L) real only
        q = jnp.dot(v, gram_ref[...],
                    preferred_element_type=jnp.float32)        # (B, L)
        gsq = jnp.sum(v * q, axis=-1, keepdims=True)           # (B, 1)
        gsq_sum = jnp.sum(gsq, axis=0, keepdims=True)          # (1, 1)

        total = adv_sum * inv_b + gsq_sum * (alpha * alpha
                                             * (gamma * 0.5) * inv_b)
        out_ref[...] = total


def alae_discriminator_loss(real_nchw, fake_nchw, params, alpha, gamma=10.0):
    """Wrapper: flatten NCHW inputs, run the fused Pallas kernel, return scalar."""
    we, be, wd, bd = params
    B = real_nchw.shape[0]
    Din, L = we.shape

    # bf16 streaming of the HBM-dominant operands (f32 accumulation in-kernel).
    xr = real_nchw.reshape(B, -1).astype(jnp.bfloat16)
    xf = fake_nchw.reshape(B, -1).astype(jnp.bfloat16)
    we_b = we.astype(jnp.bfloat16)

    # Contraction tile along Din + zero-padded Din (exact: zero rows of We /
    # zero cols of x contribute nothing to h or the Gram matrix).
    tk, din_pad = _choose_tiling(Din, B, L)
    if din_pad != Din:
        pad = din_pad - Din
        xr = jnp.pad(xr, ((0, 0), (0, pad)))
        xf = jnp.pad(xf, ((0, 0), (0, pad)))
        we_b = jnp.pad(we_b, ((0, pad), (0, 0)))
    nk = din_pad // tk

    be2 = be.reshape(1, L).astype(jnp.float32)
    wd2 = wd.reshape(1, L).astype(jnp.float32)
    scal = jnp.array([alpha, bd], dtype=jnp.float32)

    # Explicit VMEM budget: double-buffered streaming blocks + resident
    # accumulators + headroom, capped under v7x's 64 MiB physical VMEM.
    stream_bytes = 2 * (tk * L * 2 + 2 * B * tk * 2)
    resident_bytes = L * L * 4 + 2 * B * L * 4 + 8 * L * 4
    vmem_limit = min(_VMEM_LIMIT_CAP,
                     max(16 * 1024 * 1024,
                         stream_bytes + resident_bytes + (4 << 20)))

    kernel = functools.partial(_alae_disc_loss_kernel,
                               leak=float(LEAK), gamma=float(gamma),
                               inv_b=1.0 / float(B))

    out = pl.pallas_call(
        kernel,
        out_shape=jax.ShapeDtypeStruct((1, 1), jnp.float32),
        grid=(nk,),
        in_specs=[
            pl.BlockSpec(memory_space=pltpu.MemorySpace.SMEM),   # [alpha, bd]
            pl.BlockSpec((B, tk), lambda k: (0, k)),             # real x tile
            pl.BlockSpec((B, tk), lambda k: (0, k)),             # fake x tile
            pl.BlockSpec((tk, L), lambda k: (k, 0)),             # We tile
            pl.BlockSpec((1, L), lambda k: (0, 0)),              # be
            pl.BlockSpec((1, L), lambda k: (0, 0)),              # wd
        ],
        out_specs=pl.BlockSpec((1, 1), lambda k: (0, 0)),
        scratch_shapes=[
            pltpu.VMEM((B, L), jnp.float32),   # h accumulator, real
            pltpu.VMEM((B, L), jnp.float32),   # h accumulator, fake
            pltpu.VMEM((L, L), jnp.float32),   # Gram accumulator We^T We
        ],
        compiler_params=pltpu.CompilerParams(
            dimension_semantics=("arbitrary",),   # Din reduction axis
            vmem_limit_bytes=int(vmem_limit)),
    )(scal, xr, xf, we_b, be2, wd2)

    return out[0, 0]


def reference_loss(real, fake, we, be, wd, bd, alpha, gamma, leak=LEAK):
    """Pure-JAX reference (gradient penalty via autodiff)."""
    B = real.shape[0]

    def pred_fn(x):
        xflat = x.reshape(B, -1)
        h = alpha * xflat @ we + be
        z = jnp.where(h > 0, h, leak * h)
        return z @ wd + bd                          # (B,)

    pr = pred_fn(real)
    pf = pred_fn(fake)
    adv = jnp.mean(jax.nn.softplus(-pr) + jax.nn.softplus(pf))
    g = jax.grad(lambda x: jnp.sum(pred_fn(x)))(real)     # (B, C, H, W)
    gp = jnp.mean(jnp.sum(g.reshape(B, -1) ** 2, axis=1))
    return adv + gp * (gamma / 2.0)


if __name__ == "__main__":
    key = jax.random.PRNGKey(0)
    B, C, H, W = 2, 4, 16, 16          # small NCHW input
    Din = C * H * W                    # 1024
    L = 128                            # latent dim (lane aligned)

    k1, k2, k3, k4, k5 = jax.random.split(key, 5)
    real_samples = jax.random.normal(k1, (B, C, H, W), jnp.float32)
    fake_samples = jax.random.normal(k2, (B, C, H, W), jnp.float32)

    # Deterministic synthetic parameters for E and D.
    we = jax.random.normal(k3, (Din, L), jnp.float32) / jnp.sqrt(Din)
    be = jax.random.normal(k4, (L,), jnp.float32) * 0.1
    wd = jax.random.normal(k5, (L,), jnp.float32) / jnp.sqrt(L)
    bd = 0.05
    alpha = 0.7
    gamma = 10.0

    loss = alae_discriminator_loss(real_samples, fake_samples,
                                   (we, be, wd, bd), alpha, gamma)
    loss = jax.block_until_ready(loss)

    ref = reference_loss(real_samples, fake_samples, we, be, wd, bd,
                         alpha, gamma)
    # Kernel streams operands in bf16 (f32 accumulation); the f32 reference on
    # TPU also runs MXU matmuls at default (bf16-truncated) precision, so the
    # 3e-2 tolerance used previously still applies.
    np.testing.assert_allclose(np.asarray(loss), np.asarray(ref),
                               rtol=3e-2, atol=3e-2)

    print("KERNEL_OK")
</pallas_src>

<mosaic_0001>
module attributes {stable_mosaic.version = 11 : i64} {
  func.func @_alae_disc_loss_kernel(%arg0: i32, %arg1: memref<2xf32, #tpu.memory_space<smem>>, %arg2: memref<2x1024xbf16, #tpu.memory_space<vmem>>, %arg3: memref<2x1024xbf16, #tpu.memory_space<vmem>>, %arg4: memref<1024x128xbf16, #tpu.memory_space<vmem>>, %arg5: memref<1x128xf32, #tpu.memory_space<vmem>>, %arg6: memref<1x128xf32, #tpu.memory_space<vmem>>, %arg7: memref<1x1xf32, #tpu.memory_space<vmem>>, %arg8: memref<2x128xf32, #tpu.memory_space<vmem>>, %arg9: memref<2x128xf32, #tpu.memory_space<vmem>>, %arg10: memref<128x128xf32, #tpu.memory_space<vmem>>) attributes {dimension_semantics = [#tpu.dimension_semantics<arbitrary>], iteration_bounds = array<i64: 1>, scalar_prefetch = 0 : i64, scratch_operands = 3 : i64, tpu.core_type = #tpu.core_type<tc>, window_params = [{transform_indices = @transform_0, window_bounds = array<i64: 2>}, {transform_indices = @transform_1, window_bounds = array<i64: 2, 1024>}, {transform_indices = @transform_2, window_bounds = array<i64: 2, 1024>}, {transform_indices = @transform_3, window_bounds = array<i64: 1024, 128>}, {pipeline_mode = #tpu.pipeline_mode<synchronous>, transform_indices = @transform_4, window_bounds = array<i64: 1, 128>}, {pipeline_mode = #tpu.pipeline_mode<synchronous>, transform_indices = @transform_5, window_bounds = array<i64: 1, 128>}, {pipeline_mode = #tpu.pipeline_mode<synchronous>, transform_indices = @transform_6, window_bounds = array<i64: 1, 1>}]} {
    %c0_i32 = arith.constant 0 : i32
    %0 = arith.cmpi eq, %arg0, %c0_i32 : i32
    %1 = arith.extui %0 : i1 to i32
    %c0_i32_0 = arith.constant 0 : i32
    %2 = arith.cmpi ne, %1, %c0_i32_0 : i32
    scf.if %2 {
      %cst_22 = arith.constant 0.000000e+00 : f32
      %21 = vector.broadcast %cst_22 : f32 to vector<2x128xf32>
      %c0_23 = arith.constant 0 : index
      %c0_24 = arith.constant 0 : index
      %22 = vector.load %arg8[%c0_23, %c0_24] : memref<2x128xf32, #tpu.memory_space<vmem>>, vector<2x128xf32>
      tpu.vector_store %arg8[%c0_23, %c0_24], %21 {strides = array<i32>} : memref<2x128xf32, #tpu.memory_space<vmem>>, vector<2x128xf32>,
      %cst_25 = arith.constant 0.000000e+00 : f32
      %23 = vector.broadcast %cst_25 : f32 to vector<2x128xf32>
      %c0_26 = arith.constant 0 : index
      %c0_27 = arith.constant 0 : index
      %24 = vector.load %arg9[%c0_26, %c0_27] : memref<2x128xf32, #tpu.memory_space<vmem>>, vector<2x128xf32>
      tpu.vector_store %arg9[%c0_26, %c0_27], %23 {strides = array<i32>} : memref<2x128xf32, #tpu.memory_space<vmem>>, vector<2x128xf32>,
      %cst_28 = arith.constant 0.000000e+00 : f32
      %25 = vector.broadcast %cst_28 : f32 to vector<128x128xf32>
      %c0_29 = arith.constant 0 : index
      %c0_30 = arith.constant 0 : index
      %26 = vector.load %arg10[%c0_29, %c0_30] : memref<128x128xf32, #tpu.memory_space<vmem>>, vector<128x128xf32>
      tpu.vector_store %arg10[%c0_29, %c0_30], %25 {strides = array<i32>} : memref<128x128xf32, #tpu.memory_space<vmem>>, vector<128x128xf32>,
      %cst_31 = arith.constant 0.000000e+00 : f32
      %27 = vector.broadcast %cst_31 : f32 to vector<1x1xf32>
      %c0_32 = arith.constant 0 : index
      %c0_33 = arith.constant 0 : index
      %28 = vector.load %arg7[%c0_32, %c0_33] : memref<1x1xf32, #tpu.memory_space<vmem>>, vector<1x1xf32>
      tpu.vector_store %arg7[%c0_32, %c0_33], %27 {strides = array<i32>} : memref<1x1xf32, #tpu.memory_space<vmem>>, vector<1x1xf32>,
    } else {
    }
    %c0 = arith.constant 0 : index
    %c0_1 = arith.constant 0 : index
    %3 = vector.load %arg4[%c0, %c0_1] : memref<1024x128xbf16, #tpu.memory_space<vmem>>, vector<1024x128xbf16>
    %c0_2 = arith.constant 0 : index
    %c0_3 = arith.constant 0 : index
    %4 = vector.load %arg8[%c0_2, %c0_3] : memref<2x128xf32, #tpu.memory_space<vmem>>, vector<2x128xf32>
    %c0_4 = arith.constant 0 : index
    %c0_5 = arith.constant 0 : index
    %5 = vector.load %arg2[%c0_4, %c0_5] : memref<2x1024xbf16, #tpu.memory_space<vmem>>, vector<2x1024xbf16>
    %cst = arith.constant dense<0.000000e+00> : vector<2x128xf32>
    %6 = tpu.matmul %5, %3, %cst {dimension_numbers = #tpu.dot_dimension_numbers<[1], [0], [0], [1], [0, 0, 1, 1], [], []>} : vector<2x1024xbf16>, vector<1024x128xbf16>, vector<2x128xf32> -> vector<2x128xf32>
    %7 = arith.addf %4, %6 : vector<2x128xf32>
    %c0_6 = arith.constant 0 : index
    %c0_7 = arith.constant 0 : index
    %8 = vector.load %arg8[%c0_6, %c0_7] : memref<2x128xf32, #tpu.memory_space<vmem>>, vector<2x128xf32>
    tpu.vector_store %arg8[%c0_6, %c0_7], %7 {strides = array<i32>} : memref<2x128xf32, #tpu.memory_space<vmem>>, vector<2x128xf32>,
    %c0_8 = arith.constant 0 : index
    %c0_9 = arith.constant 0 : index
    %9 = vector.load %arg9[%c0_8, %c0_9] : memref<2x128xf32, #tpu.memory_space<vmem>>, vector<2x128xf32>
    %c0_10 = arith.constant 0 : index
    %c0_11 = arith.constant 0 : index
    %10 = vector.load %arg3[%c0_10, %c0_11] : memref<2x1024xbf16, #tpu.memory_space<vmem>>, vector<2x1024xbf16>
    %cst_12 = arith.constant dense<0.000000e+00> : vector<2x128xf32>
    %11 = tpu.matmul %10, %3, %cst_12 {dimension_numbers = #tpu.dot_dimension_numbers<[1], [0], [0], [1], [0, 0, 1, 1], [], []>} : vector<2x1024xbf16>, vector<1024x128xbf16>, vector<2x128xf32> -> vector<2x128xf32>
    %12 = arith.addf %9, %11 : vector<2x128xf32>
    %c0_13 = arith.constant 0 : index
    %c0_14 = arith.constant 0 : index
    %13 = vector.load %arg9[%c0_13, %c0_14] : memref<2x128xf32, #tpu.memory_space<vmem>>, vector<2x128xf32>
    tpu.vector_store %arg9[%c0_13, %c0_14], %12 {strides = array<i32>} : memref<2x128xf32, #tpu.memory_space<vmem>>, vector<2x128xf32>,
    %c0_15 = arith.constant 0 : index
    %c0_16 = arith.constant 0 : index
    %14 = vector.load %arg10[%c0_15, %c0_16] : memref<128x128xf32, #tpu.memory_space<vmem>>, vector<128x128xf32>
    %cst_17 = arith.constant dense<0.000000e+00> : vector<128x128xf32>
    %15 = tpu.matmul %3, %3, %cst_17 {dimension_numbers = #tpu.dot_dimension_numbers<[0], [0], [1], [1], [0, 1, 1, 1], [], []>} : vector<1024x128xbf16>, vector<1024x128xbf16>, vector<128x128xf32> -> vector<128x128xf32>
    %16 = arith.addf %14, %15 : vector<128x128xf32>
    %c0_18 = arith.constant 0 : index
    %c0_19 = arith.constant 0 : index
    %17 = vector.load %arg10[%c0_18, %c0_19] : memref<128x128xf32, #tpu.memory_space<vmem>>, vector<128x128xf32>
    tpu.vector_store %arg10[%c0_18, %c0_19], %16 {strides = array<i32>} : memref<128x128xf32, #tpu.memory_space<vmem>>, vector<128x128xf32>,
    %c0_i32_20 = arith.constant 0 : i32
    %18 = arith.cmpi eq, %arg0, %c0_i32_20 : i32
    %19 = arith.extui %18 : i1 to i32
    %c0_i32_21 = arith.constant 0 : i32
    %20 = arith.cmpi ne, %19, %c0_i32_21 : i32
    scf.if %20 {
      %c0_22 = arith.constant 0 : index
      %21 = memref.load %arg1[%c0_22] : memref<2xf32, #tpu.memory_space<smem>>
      %c1 = arith.constant 1 : index
      %22 = memref.load %arg1[%c1] : memref<2xf32, #tpu.memory_space<smem>>
      %c0_23 = arith.constant 0 : index
      %c0_24 = arith.constant 0 : index
      %23 = vector.load %arg5[%c0_23, %c0_24] : memref<1x128xf32, #tpu.memory_space<vmem>>, vector<1x128xf32>
      %c0_25 = arith.constant 0 : index
      %c0_26 = arith.constant 0 : index
      %24 = vector.load %arg6[%c0_25, %c0_26] : memref<1x128xf32, #tpu.memory_space<vmem>>, vector<1x128xf32>
      %c0_27 = arith.constant 0 : index
      %c0_28 = arith.constant 0 : index
      %25 = vector.load %arg8[%c0_27, %c0_28] : memref<2x128xf32, #tpu.memory_space<vmem>>, vector<2x128xf32>
      %26 = vector.broadcast %21 : f32 to vector<2x128xf32>
      %27 = arith.mulf %26, %25 : vector<2x128xf32>
      %28 = vector.broadcast %23 : vector<1x128xf32> to vector<2x128xf32>
      %29 = arith.addf %27, %28 : vector<2x128xf32>
      %c0_29 = arith.constant 0 : index
      %c0_30 = arith.constant 0 : index
      %30 = vector.load %arg9[%c0_29, %c0_30] : memref<2x128xf32, #tpu.memory_space<vmem>>, vector<2x128xf32>
      %31 = vector.broadcast %21 : f32 to vector<2x128xf32>
      %32 = arith.mulf %31, %30 : vector<2x128xf32>
      %33 = vector.broadcast %23 : vector<1x128xf32> to vector<2x128xf32>
      %34 = arith.addf %32, %33 : vector<2x128xf32>
      %cst_31 = arith.constant 0.000000e+00 : f32
      %35 = vector.broadcast %cst_31 : f32 to vector<2x128xf32>
      %36 = arith.cmpf ogt, %29, %35 : vector<2x128xf32>
      %cst_32 = arith.constant 2.000000e-01 : f32
      %37 = vector.broadcast %cst_32 : f32 to vector<2x128xf32>
      %38 = arith.mulf %37, %29 : vector<2x128xf32>
      %39 = arith.select %36, %29, %38 : vector<2x128xi1>, vector<2x128xf32>
      %cst_33 = arith.constant 0.000000e+00 : f32
      %40 = vector.broadcast %cst_33 : f32 to vector<2x128xf32>
      %41 = arith.cmpf ogt, %34, %40 : vector<2x128xf32>
      %cst_34 = arith.constant 2.000000e-01 : f32
      %42 = vector.broadcast %cst_34 : f32 to vector<2x128xf32>
      %43 = arith.mulf %42, %34 : vector<2x128xf32>
      %44 = arith.select %41, %34, %43 : vector<2x128xi1>, vector<2x128xf32>
      %45 = vector.broadcast %24 : vector<1x128xf32> to vector<2x128xf32>
      %46 = arith.mulf %39, %45 : vector<2x128xf32>
      %cst_35 = arith.constant dense<0.000000e+00> : vector<2xf32>
      %47 = vector.multi_reduction <add>, %46, %cst_35 [1] : vector<2x128xf32> to vector<2xf32>
      %48 = vector.shape_cast %47 : vector<2xf32> to vector<2x1xf32>
      %49 = vector.broadcast %22 : f32 to vector<2x1xf32>
      %50 = arith.addf %48, %49 : vector<2x1xf32>
      %51 = vector.broadcast %24 : vector<1x128xf32> to vector<2x128xf32>
      %52 = arith.mulf %44, %51 : vector<2x128xf32>
      %cst_36 = arith.constant dense<0.000000e+00> : vector<2xf32>
      %53 = vector.multi_reduction <add>, %52, %cst_36 [1] : vector<2x128xf32> to vector<2xf32>
      %54 = vector.shape_cast %53 : vector<2xf32> to vector<2x1xf32>
      %55 = vector.broadcast %22 : f32 to vector<2x1xf32>
      %56 = arith.addf %54, %55 : vector<2x1xf32>
      %cst_37 = arith.constant 0.000000e+00 : f32
      %57 = vector.broadcast %cst_37 : f32 to vector<2x1xf32>
      %58 = arith.subf %57, %50 : vector<2x1xf32>
      %cst_38 = arith.constant 0.000000e+00 : f32
      %59 = vector.broadcast %cst_38 : f32 to vector<2x1xf32>
      %60 = arith.maximumf %58, %59 : vector<2x1xf32>
      %61 = math.absf %58 : vector<2x1xf32>
      %cst_39 = arith.constant 0.000000e+00 : f32
      %62 = vector.broadcast %cst_39 : f32 to vector<2x1xf32>
      %63 = arith.subf %62, %61 : vector<2x1xf32>
      %64 = math.exp %63 : vector<2x1xf32>
      %65 = math.log1p %64 : vector<2x1xf32>
      %66 = arith.addf %60, %65 : vector<2x1xf32>
      %cst_40 = arith.constant dense<0.000000e+00> : vector<1xf32>
      %67 = vector.multi_reduction <add>, %66, %cst_40 [0] : vector<2x1xf32> to vector<1xf32>
      %68 = vector.shape_cast %67 : vector<1xf32> to vector<1x1xf32>
      %cst_41 = arith.constant 0.000000e+00 : f32
      %69 = vector.broadcast %cst_41 : f32 to vector<2x1xf32>
      %70 = arith.maximumf %56, %69 : vector<2x1xf32>
      %71 = math.absf %56 : vector<2x1xf32>
      %cst_42 = arith.constant 0.000000e+00 : f32
      %72 = vector.broadcast %cst_42 : f32 to vector<2x1xf32>
      %73 = arith.subf %72, %71 : vector<2x1xf32>
      %74 = math.exp %73 : vector<2x1xf32>
      %75 = math.log1p %74 : vector<2x1xf32>
      %76 = arith.addf %70, %75 : vector<2x1xf32>
      %cst_43 = arith.constant dense<0.000000e+00> : vector<1xf32>
      %77 = vector.multi_reduction <add>, %76, %cst_43 [0] : vector<2x1xf32> to vector<1xf32>
      %78 = vector.shape_cast %77 : vector<1xf32> to vector<1x1xf32>
      %79 = arith.addf %68, %78 : vector<1x1xf32>
      %cst_44 = arith.constant 0.000000e+00 : f32
      %80 = vector.broadcast %cst_44 : f32 to vector<2x128xf32>
      %81 = arith.cmpf ogt, %29, %80 : vector<2x128xf32>
      %cst_45 = arith.constant 1.000000e+00 : f32
      %cst_46 = arith.constant 2.000000e-01 : f32
      %82 = vector.broadcast %cst_45 : f32 to vector<2x128xf32>
      %83 = vector.broadcast %cst_46 : f32 to vector<2x128xf32>
      %84 = arith.select %81, %82, %83 : vector<2x128xi1>, vector<2x128xf32>
      %85 = vector.broadcast %24 : vector<1x128xf32> to vector<2x128xf32>
      %86 = arith.mulf %84, %85 : vector<2x128xf32>
      %c0_47 = arith.constant 0 : index
      %c0_48 = arith.constant 0 : index
      %87 = vector.load %arg10[%c0_47, %c0_48] : memref<128x128xf32, #tpu.memory_space<vmem>>, vector<128x128xf32>
      %cst_49 = arith.constant dense<0.000000e+00> : vector<2x128xf32>
      %88 = tpu.matmul %86, %87, %cst_49 {dimension_numbers = #tpu.dot_dimension_numbers<[1], [0], [0], [1], [0, 0, 1, 1], [], []>} : vector<2x128xf32>, vector<128x128xf32>, vector<2x128xf32> -> vector<2x128xf32>
      %89 = arith.mulf %86, %88 : vector<2x128xf32>
      %cst_50 = arith.constant dense<0.000000e+00> : vector<2xf32>
      %90 = vector.multi_reduction <add>, %89, %cst_50 [1] : vector<2x128xf32> to vector<2xf32>
      %91 = vector.shape_cast %90 : vector<2xf32> to vector<2x1xf32>
      %cst_51 = arith.constant dense<0.000000e+00> : vector<1xf32>
      %92 = vector.multi_reduction <add>, %91, %cst_51 [0] : vector<2x1xf32> to vector<1xf32>
      %93 = vector.shape_cast %92 : vector<1xf32> to vector<1x1xf32>
      %cst_52 = arith.constant 5.000000e-01 : f32
      %94 = vector.broadcast %cst_52 : f32 to vector<1x1xf32>
      %95 = arith.mulf %79, %94 : vector<1x1xf32>
      %96 = arith.mulf %21, %21 : f32
      %cst_53 = arith.constant 5.000000e+00 : f32
      %97 = arith.mulf %96, %cst_53 : f32
      %cst_54 = arith.constant 5.000000e-01 : f32
      %98 = arith.mulf %97, %cst_54 : f32
      %99 = vector.broadcast %98 : f32 to vector<1x1xf32>
      %100 = arith.mulf %93, %99 : vector<1x1xf32>
      %101 = arith.addf %95, %100 : vector<1x1xf32>
      %c0_55 = arith.constant 0 : index
      %c0_56 = arith.constant 0 : index
      %102 = vector.load %arg7[%c0_55, %c0_56] : memref<1x1xf32, #tpu.memory_space<vmem>>, vector<1x1xf32>
      tpu.vector_store %arg7[%c0_55, %c0_56], %101 {strides = array<i32>} : memref<1x1xf32, #tpu.memory_space<vmem>>, vector<1x1xf32>,
    } else {
    }
    return
  }
  func.func @transform_0(%arg0: i32) -> i32 {
    %c0_i32 = arith.constant 0 : i32
    %c0_i32_0 = arith.constant 0 : i32
    return %c0_i32 : i32
  }
  func.func @transform_1(%arg0: i32) -> (i32, i32) {
    %c0_i32 = arith.constant 0 : i32
    %c0_i32_0 = arith.constant 0 : i32
    return %c0_i32, %arg0 : i32, i32
  }
  func.func @transform_2(%arg0: i32) -> (i32, i32) {
    %c0_i32 = arith.constant 0 : i32
    %c0_i32_0 = arith.constant 0 : i32
    return %c0_i32, %arg0 : i32, i32
  }
  func.func @transform_3(%arg0: i32) -> (i32, i32) {
    %c0_i32 = arith.constant 0 : i32
    %c0_i32_0 = arith.constant 0 : i32
    return %arg0, %c0_i32 : i32, i32
  }
  func.func @transform_4(%arg0: i32) -> (i32, i32) {
    %c0_i32 = arith.constant 0 : i32
    %c0_i32_0 = arith.constant 0 : i32
    %c0_i32_1 = arith.constant 0 : i32
    return %c0_i32, %c0_i32_0 : i32, i32
  }
  func.func @transform_5(%arg0: i32) -> (i32, i32) {
    %c0_i32 = arith.constant 0 : i32
    %c0_i32_0 = arith.constant 0 : i32
    %c0_i32_1 = arith.constant 0 : i32
    return %c0_i32, %c0_i32_0 : i32, i32
  }
  func.func @transform_6(%arg0: i32) -> (i32, i32) {
    %c0_i32 = arith.constant 0 : i32
    %c0_i32_0 = arith.constant 0 : i32
    %c0_i32_1 = arith.constant 0 : i32
    return %c0_i32, %c0_i32_0 : i32, i32
  }
}

</mosaic_0001>

<bundles_post_ra>
// kernel: tpu_custom_call.1
= control target key start
LH: loop header
LB: loop body
LE: loop exit
PB: predicated region body
PF: predicated region fallthrough
CT: control target
= control target key end

     0   :  { %11 = vsyncpa [#allocation8], 0  ;;  %s3298_s0 = inlined_call_operand.hbm [shape: f32[2], index: 0, kind: input, shape index: {}]   ;;  %s3299_s1 = inlined_call_operand.hbm [shape: bf16[2,1024], index: 1, kind: input, shape index: {}]   ;;  %s3300_s2 = inlined_call_operand.hbm [shape: bf16[2,1024], index: 2, kind: input, shape index: {}]   ;;  %s3301_s3 = inlined_call_operand.hbm [shape: bf16[1024,128], index: 3, kind: input, shape index: {}]   ;;  %s3302_s4 = inlined_call_operand.vmem [shape: f32[1,128], index: 4, kind: input, shape index: {}]   ;;  %s3303_s5 = inlined_call_operand.vmem [shape: f32[1,128], index: 5, kind: input, shape index: {}]   ;;  %s3304_s6 = inlined_call_operand.hbm [shape: f32[1,1], index: 6, kind: output, shape index: {}]  }
   0x1   :  { %12 = vsyncpa [#allocation6], 0 }
   0x2   :  { %13 = vsyncpa [#allocation11], 0 }
   0x3   :  { %14 = vsyncpa [#allocation7], 0  ;;  %s2599_s21 = smov [#allocation10]   ;;  %s2600_s23 = smov [#allocation9]  }
   0x4   :  { %s39_s22 = sshll.u32 %s2599_s21, 4  ;;  %s29_s24 = sshll.u32 %s2600_s23, 4  ;;  %s40_s22 = int_to_ptr.vmem [resolvable:$true] %s39_s22  ;;  %s30_s24 = int_to_ptr.vmem [resolvable:$true] %s29_s24 }
   0x5   :  { %s2493_s27 = scalar_lea.hbm %s3300_s2, 128 }
   0x6   :  { %p2494_p0 = scmp.ne.s32.totalorder %s3300_s2, %s2493_s27  ;;  %p2497_p1 = scmp.lt.u32.totalorder %s2493_s27, %s3300_s2 }
   0x8   :  { %p2499_p2 = pnand %p2497_p1, %p2494_p0 }
   0xa   :  { %2502 = shalt.err (!%p2499_p2)
}
   0xb   :  { %s2503_s8 = scalar_lea.vmem %s40_s22, 128  ;;  %p2508_p4 = scmp.lt.s32.totalorder %s40_s22, %s40_s22 }
   0xc   :  { %p2504_p3 = scmp.ne.s32.totalorder %s40_s22, %s2503_s8  ;;  %p2509_p5 = scmp.lt.s32.totalorder %s2503_s8, %s2503_s8 }
   0xe   :  { %p2510_p6 = por %p2509_p5, %p2508_p4 }
  0x10   :  { %p2511_p7 = pnand %p2510_p6, %p2504_p3 }
  0x12   :  { %2514 = shalt.err (!%p2511_p7)
}
  0x13   :  { %42 = dma.hbm_to_vmem [thread:$0]  %s3300_s2, 128, %s40_s22, [#allocation11]  }
  0x14   :  { %s2515_s13 = scalar_lea.hbm %s3298_s0, 16 }
  0x15   :  { %p2516_p8 = scmp.ne.s32.totalorder %s3298_s0, %s2515_s13  ;;  %p2519_p9 = scmp.lt.u32.totalorder %s2515_s13, %s3298_s0 }
  0x17   :  { %p2521_p10 = pnand %p2519_p9, %p2516_p8 }
  0x19   :  { %2524 = shalt.err (!%p2521_p10)
}
  0x1a   :  { %s2601_s18 = smov [#allocation5]   ;;  %s2525_s22 = scalar_lea.hbm %s3299_s1, 128 }
  0x1b   :  { %22 = dma.hbm_to_smem %s3298_s0, 16, %s2601_s18, [#allocation8]  }
  0x1c   :  { %p2526_p11 = scmp.ne.s32.totalorder %s3299_s1, %s2525_s22  ;;  %p2529_p12 = scmp.lt.u32.totalorder %s2525_s22, %s3299_s1 }
  0x1e   :  { %p2531_p13 = pnand %p2529_p12, %p2526_p11 }
  0x20   :  { %2534 = shalt.err (!%p2531_p13)
}
  0x21   :  { %s2535_s28 = scalar_lea.vmem %s30_s24, 128  ;;  %p2540_p1 = scmp.lt.s32.totalorder %s30_s24, %s30_s24 }
  0x22   :  { %p2536_p0 = scmp.ne.s32.totalorder %s30_s24, %s2535_s28  ;;  %p2541_p2 = scmp.lt.s32.totalorder %s2535_s28, %s2535_s28 }
  0x24   :  { %p2542_p3 = por %p2541_p2, %p2540_p1 }
  0x26   :  { %p2543_p4 = pnand %p2542_p3, %p2536_p0 }
  0x28   :  { %2546 = shalt.err (!%p2543_p4)
}
  0x29   :  { %32 = dma.hbm_to_vmem [thread:$0]  %s3299_s1, 128, %s30_s24, [#allocation6]  }
  0x2a   :  { %s2602_s30 = smov [#allocation12]   ;;  %s2547_s10 = scalar_lea.hbm %s3301_s3, 8192 }
  0x2b   :  { %s48_s7 = sshll.u32 %s2602_s30, 4  ;;  %p2548_p5 = scmp.ne.s32.totalorder %s3301_s3, %s2547_s10  ;;  %s49_s7 = int_to_ptr.vmem [resolvable:$true] %s48_s7 }
  0x2c   :  { %p2551_p6 = scmp.lt.u32.totalorder %s2547_s10, %s3301_s3 }
  0x2e   :  { %p2553_p7 = pnand %p2551_p6, %p2548_p5 }
  0x30   :  { %2556 = shalt.err (!%p2553_p7)
}
  0x31   :  { %s2557_s15 = scalar_lea.vmem %s49_s7, 8192  ;;  %p2562_p9 = scmp.lt.s32.totalorder %s49_s7, %s49_s7 }
  0x32   :  { %p2558_p8 = scmp.ne.s32.totalorder %s49_s7, %s2557_s15  ;;  %p2563_p10 = scmp.lt.s32.totalorder %s2557_s15, %s2557_s15 }
  0x34   :  { %p2564_p11 = por %p2563_p10, %p2562_p9 }
  0x36   :  { %p2565_p12 = pnand %p2564_p11, %p2558_p8 }
  0x38   :  { %2568 = shalt.err (!%p2565_p12)
}
  0x39   :  { %s2603_s1 = smov 64   ;;  %s2604_s24 = smov 4  }
  0x3a   :  { %54 = dma.hbm_to_vmem [thread:$0]  %s3301_s3, 8192, %s49_s7, [#allocation11], %s2603_s1, %s2603_s1, %s2604_s24  }
  0x3b   :  { %2591 = dma.done.wait [#allocation8], 16  }
  0x3c   :  { %2592 = vsyncadd [#allocation8], 4294967280 }
  0x3d   :  { %2593 = dma.done.wait [#allocation6], 128  }
  0x3e   :  { %2594 = vsyncadd [#allocation6], 4294967168 }
  0x3f   :  { %2595 = dma.done.wait [#allocation11], 8320  }
  0x40   :  { %2596 = vsyncadd [#allocation11], 4294958976 }
  0x41   :  { %71 = sfence }
  0x42   :  { %v2694_v0 = vld [vmem:[#allocation12 + $0x40] sm:$0xff]   ;;  %v2706_v4 = vld [vmem:[#allocation12 + $0x48] sm:$0xff]   ;;  %v2720_v8 = vld [vmem:[#allocation12 + $0x50] sm:$0xff]   ;;  %v232_v28 = vlaneseq  ;;  %v2605_v36 = vmov 1966171168   ;;  %s3195_s3 = sld [smem:[#allocation5]] }
  0x43   :  { %v2696_v1 = vld [vmem:[#allocation12 + $0xc0] sm:$0xff]   ;;  %1899 = vmatprep.subr.bf16.mxu0 %v2694_v0  ;;  %1085 = vxpose.xlu0.c.b16.start [1/8] %v2694_v0, 128  ;;  %v2710_v5 = vld [vmem:[#allocation12 + $0xc8] sm:$0xff]   ;;  %v2724_v9 = vld [vmem:[#allocation12 + $0xd0] sm:$0xff]   ;;  %v230_v37 = vunpack.c.l.s4 %v2605_v36  ;;  %vm1650_vm1 = vcmask 1041408   ;;  %vm2608_vm3 = vmmov 0   ;;  %vm95_vm4 = vcmask 0  }
  0x44   :  { %v2699_v2 = vld [vmem:[#allocation12] sm:$0xff]   ;;  %1921 = vmatprep.subr.bf16.mxu1 %v2696_v1  ;;  %v2713_v6 = vld [vmem:[#allocation12 + $0x8] sm:$0xff]   ;;  %v2727_v10 = vld [vmem:[#allocation12 + $0x10] sm:$0xff]   ;;  %v233_v33 = vshrl.u32 %v232_v28, 7  ;;  %s2610_s23 = smov [#allocation13]  }
  0x45   :  { %v2703_v3 = vld [vmem:[#allocation12 + $0x80] sm:$0xff]   ;;  %1900 = vmatpush3.bf16.msra.mxu0 %v2699_v2  ;;  %1069 = vxpose.xlu1.c.b16.start [1/8] %v2699_v2, 128  ;;  %v2717_v7 = vld [vmem:[#allocation12 + $0x88] sm:$0xff]   ;;  %v2731_v11 = vld [vmem:[#allocation12 + $0x90] sm:$0xff]   ;;  %v231_v40 = vunpack.c.0.s8 %v230_v37  ;;  %s1821_s25 = sshll.u32 %s2610_s23, 4  ;;  %s1822_s25 = int_to_ptr.vmem [resolvable:$true] %s1821_s25 }
  0x46   :  { %1922 = vmatpush3.bf16.msra.mxu1 %v2703_v3  ;;  %1901 = vmatprep.subr.bf16.mxu0 %v2706_v4  ;;  %v2734_v12 = vld [vmem:[#allocation12 + $0x58] sm:$0xff]   ;;  %v2748_v16 = vld [vmem:[#allocation12 + $0x60] sm:$0xff]   ;;  %v2762_v20 = vld [vmem:[#allocation12 + $0x68] sm:$0xff]   ;;  %s2569_s26 = scalar_lea.vmem %s1822_s25, 16  ;;  %s2573_s27 = scalar_lea.vmem %s1822_s25, 32 }
  0x47   :  { %1086 = vxpose.xlu0.c.b16.cont [2/8] %v2706_v4, 128  ;;  %1923 = vmatprep.subr.bf16.mxu1 %v2710_v5  ;;  %v2738_v13 = vld [vmem:[#allocation12 + $0xd8] sm:$0xff]   ;;  %v2752_v17 = vld [vmem:[#allocation12 + $0xe0] sm:$0xff]   ;;  %v2766_v21 = vld [vmem:[#allocation12 + $0xe8] sm:$0xff]   ;;  %v2813_v41 = vsub.s32 %v231_v40, %v233_v33  ;;  %p2570_p13 = scmp.ne.s32.totalorder %s1822_s25, %s2569_s26  ;;  %p2574_p0 = scmp.lt.s32.totalorder %s1822_s25, %s1822_s25 }
  0x48   :  { %v2741_v14 = vld [vmem:[#allocation12 + $0x18] sm:$0xff]   ;;  %v2755_v18 = vld [vmem:[#allocation12 + $0x20] sm:$0xff]   ;;  %v2769_v22 = vld [vmem:[#allocation12 + $0x28] sm:$0xff]   ;;  %p2575_p1 = scmp.lt.s32.totalorder %s2573_s27, %s2569_s26 }
  0x49   :  { %1902 = vmatpush3.bf16.msra.mxu0 %v2713_v6  ;;  %1070 = vxpose.xlu1.c.b16.cont [2/8] %v2713_v6, 128  ;;  %v2745_v15 = vld [vmem:[#allocation12 + $0x98] sm:$0xff]   ;;  %v2759_v19 = vld [vmem:[#allocation12 + $0xa0] sm:$0xff]   ;;  %v2773_v23 = vld [vmem:[#allocation12 + $0xa8] sm:$0xff]  }
  0x4a   :  { %1924 = vmatpush3.bf16.msra.mxu1 %v2717_v7  ;;  %1903 = vmatprep.subr.bf16.mxu0 %v2720_v8  ;;  %v2776_v24 = vld [vmem:[#allocation12 + $0xf0] sm:$0xff]   ;;  %v2789_v29 = vld [vmem:[#allocation12 + $0xf8] sm:$0xff]   ;;  %v2803_v35 = vld [vmem:[#allocation12 + $0x1c0] sm:$0xff]   ;;  %p2576_p2 = por %p2575_p1, %p2574_p0 }
  0x4b   :  { %1087 = vxpose.xlu0.c.b16.cont [3/8] %v2720_v8, 128  ;;  %1925 = vmatprep.subr.bf16.mxu1 %v2724_v9  ;;  %v2780_v25 = vld [vmem:[#allocation12 + $0x70] sm:$0xff]   ;;  %3329 = vst [vmem:[#allocation18_spill] sm:$0xff] %v2789_v29  ;;  %v2793_v30 = vld [vmem:[#allocation12 + $0x78] sm:$0xff]   ;;  %v2808_v38 = vld [vmem:[#allocation12 + $0x140] sm:$0xff]  }
  0x4c   :  { %v2783_v26 = vld [vmem:[#allocation12 + $0xb0] sm:$0xff]   ;;  %3330 = vst [vmem:[#allocation19_spill] sm:$0xff] %v2793_v30  ;;  %v2796_v31 = vld [vmem:[#allocation12 + $0xb8] sm:$0xff]   ;;  %v2826_v48 = vld [vmem:[#allocation12 + $0x100] sm:$0xff]   ;;  %p2577_p3 = pnand %p2576_p2, %p2570_p13 }
  0x4d   :  { %1904 = vmatpush3.bf16.msra.mxu0 %v2727_v10  ;;  %1071 = vxpose.xlu1.c.b16.cont [3/8] %v2727_v10, 128  ;;  %v2786_v27 = vld [vmem:[#allocation12 + $0x30] sm:$0xff]   ;;  %v2800_v32 = vld [vmem:[#allocation12 + $0x38] sm:$0xff]   ;;  %v2830_v51 = vld [vmem:[#allocation12 + $0x148] sm:$0xff]  }
  0x4e   :  { %1926 = vmatpush3.bf16.msra.mxu1 %v2731_v11  ;;  %1905 = vmatprep.subr.bf16.mxu0 %v2734_v12  ;;  %v226_v34 = vld [vmem:[#allocation9] sm:$0xff]  ;;  %v2832_v53 = vld [vmem:[#allocation12 + $0x180] sm:$0xff]   ;;  %v2834_v54 = vld [vmem:[#allocation12 + $0x1c8] sm:$0xff]  }
  0x4f   :  { %1088 = vxpose.xlu0.c.b16.cont [4/8] %v2734_v12, 128  ;;  %1927 = vmatprep.subr.bf16.mxu1 %v2738_v13  ;;  %v228_v39 = vcombine.high %v226_v34, %v226_v34  ;;  %v235_v42 = vrot.slane %v226_v34, %v2813_v41  ;;  %v2838_v56 = vld [vmem:[#allocation12 + $0x108] sm:$0xff]   ;;  %v2841_v57 = vld [vmem:[#allocation12 + $0x150] sm:$0xff]   ;;  %v2854_v61 = vld [vmem:[#allocation12 + $0x158] sm:$0xff]  }
  0x50   :  { %v2844_v58 = vld [vmem:[#allocation12 + $0x188] sm:$0xff]   ;;  %v2847_v59 = vld [vmem:[#allocation12 + $0x1d0] sm:$0xff]   ;;  %3332 = vst [vmem:[#allocation21_spill] sm:$0xff] %v2854_v61  ;;  %v2861_v63 = vld [vmem:[#allocation12 + $0x1d8] sm:$0xff]  }
  0x51   :  { %1906 = vmatpush3.bf16.msra.mxu0 %v2741_v14  ;;  %1072 = vxpose.xlu1.c.b16.cont [4/8] %v2741_v14, 128  ;;  %v2819_v43 = vrot.slane %v228_v39, %v2813_v41  ;;  %v243_v44 = vcombine.high %v235_v42, %v235_v42  ;;  %v251_v45 = vrot.slane %v235_v42, %v2813_v41  ;;  %v2850_v60 = vld [vmem:[#allocation12 + $0x110] sm:$0xff]   ;;  %v2864_v28 = vld [vmem:[#allocation12 + $0x118] sm:$0xff]   ;;  %v2868_v33 = vld [vmem:[#allocation12 + $0x160] sm:$0xff]  }
  0x52   :  { %1928 = vmatpush3.bf16.msra.mxu1 %v2745_v15  ;;  %1907 = vmatprep.subr.bf16.mxu0 %v2748_v16  ;;  %3331 = vst [vmem:[#allocation20_spill] sm:$0xff] %v2850_v60  ;;  %v2858_v62 = vld [vmem:[#allocation12 + $0x190] sm:$0xff]   ;;  %3334 = vst [vmem:[#allocation23_spill] sm:$0xff] %v2861_v63  ;;  %v2872_v34 = vld [vmem:[#allocation12 + $0x198] sm:$0xff]  }
  0x53   :  { %1089 = vxpose.xlu0.c.b16.cont [5/8] %v2748_v16, 128  ;;  %1929 = vmatprep.subr.bf16.mxu1 %v2752_v17  ;;  %v244_v46 = vcombine.high %v2819_v43, %v2819_v43  ;;  %v265_v47 = vrot.slane %v243_v44, %v2813_v41  ;;  %v273_v50 = vcombine.high %v251_v45, %v251_v45  ;;  %v2875_v36 = vld [vmem:[#allocation12 + $0x1e0] sm:$0xff]   ;;  %v2882_v39 = vld [vmem:[#allocation12 + $0x168] sm:$0xff]  }
  0x54   :  { %3333 = vst [vmem:[#allocation22_spill] sm:$0xff] %v2858_v62  ;;  %3335 = vst [vmem:[#allocation24_spill] sm:$0xff] %v2864_v28  ;;  %v2878_v37 = vld [vmem:[#allocation12 + $0x120] sm:$0xff]   ;;  %v2889_v42 = vld [vmem:[#allocation12 + $0x1e8] sm:$0xff]  }
  0x55   :  { %1908 = vmatpush3.bf16.msra.mxu0 %v2755_v18  ;;  %1073 = vxpose.xlu1.c.b16.cont [5/8] %v2755_v18, 128  ;;  %v272_v49 = vrot.slane %v244_v46, %v2813_v41  ;;  %v275_v52 = vcombine.high %v265_v47, %v265_v47  ;;  %3336 = vst [vmem:[#allocation25_spill] sm:$0xff] %v2868_v33  ;;  %3337 = vst [vmem:[#allocation26_spill] sm:$0xff] %v2872_v34  ;;  %v2886_v40 = vld [vmem:[#allocation12 + $0x1a0] sm:$0xff]   ;;  %v2892_v44 = vld [vmem:[#allocation12 + $0x128] sm:$0xff]  }
  0x56   :  { %1930 = vmatpush3.bf16.msra.mxu1 %v2759_v19  ;;  %1909 = vmatprep.subr.bf16.mxu0 %v2762_v20  ;;  %3338 = vst [vmem:[#allocation27_spill] sm:$0xff] %v2875_v36  ;;  %3339 = vst [vmem:[#allocation28_spill] sm:$0xff] %v2878_v37  ;;  %v2899_v46 = vld [vmem:[#allocation10] sm:$0xff] }
  0x57   :  { %1090 = vxpose.xlu0.c.b16.cont [6/8] %v2762_v20, 128  ;;  %1931 = vmatprep.subr.bf16.mxu1 %v2766_v21  ;;  %v276_v55 = vcombine.high %v272_v49, %v272_v49  ;;  %3340 = vst [vmem:[#allocation29_spill] sm:$0xff] %v2886_v40  ;;  %3341 = vst [vmem:[#allocation30_spill] sm:$0xff] %v2889_v42 }
  0x58   :  { %701 = vmatprep.mubr.bf16.mxu0 %v265_v47  ;;  %741 = vmatprep.mubr.bf16.mxu1 %v275_v52  ;;  %v2902_v47 = vld [vmem:[#allocation12 + $0x1a8] sm:$0xff]   ;;  %v2912_v52 = vld [vmem:[#allocation12 + $0x130] sm:$0xff]  }
  0x59   :  { %1910 = vmatpush3.bf16.msra.mxu0 %v2769_v22  ;;  %1074 = vxpose.xlu1.c.b16.cont [6/8] %v2769_v22, 128  ;;  %3343 = vst [vmem:[#allocation32_spill] sm:$0xff] %v2902_v47 }
  0x5a   :  { %1932 = vmatpush3.bf16.msra.mxu1 %v2773_v23  ;;  %1911 = vmatprep.subr.bf16.mxu0 %v2780_v25 }
  0x5b   :  { %1933 = vmatprep.subr.bf16.mxu1 %v2776_v24  ;;  %1091 = vxpose.xlu0.c.b16.cont [7/8] %v2780_v25, 128 }
  0x5d   :  { %1912 = vmatpush3.bf16.msra.mxu0 %v2786_v27  ;;  %1075 = vxpose.xlu1.c.b16.cont [7/8] %v2786_v27, 128 }
  0x5e   :  { %1934 = vmatpush3.bf16.msra.mxu1 %v2783_v26  ;;  %1913 = vmatprep.subr.bf16.mxu0 %v2793_v30 }
  0x5f   :  { %1935 = vmatprep.subr.bf16.mxu1 %v2789_v29  ;;  %1092 = vxpose.xlu0.c.b16.end [8/8] %v2793_v30, 128 }
  0x61   :  { %1914 = vmatpush3.bf16.msra.mxu0 %v2800_v32  ;;  %1076 = vxpose.xlu1.c.b16.end [8/8] %v2800_v32, 128 }
  0x62   :  { %1936 = vmatpush3.bf16.msra.mxu1 %v2796_v31  ;;  %1943 = vmatprep.subr.bf16.mxu0 %v2808_v38 }
  0x63   :  { %1965 = vmatprep.subr.bf16.mxu1 %v2803_v35  ;;  %1117 = vxpose.xlu0.c.b16.start [1/8] %v2696_v1, 128 }
  0x64   :  { %702 = vmatmul.mubr.bf16.vlgmr.msra.gmra.mrb[0].mxu0 %v251_v45  ;;  %v2896_v45 = vld [vmem:[#allocation12 + $0x170] sm:$0xff]  }
  0x65   :  { %1101 = vxpose.xlu1.c.b16.start [1/8] %v2703_v3, 128  ;;  %1944 = vmatpush3.bf16.msra.mxu0 %v2826_v48  ;;  %3342 = vst [vmem:[#allocation31_spill] sm:$0xff] %v2896_v45 }
  0x66   :  { %742 = vmatmul.mubr.bf16.vlgmr.msra.gmra.mrb[0].mxu1 %v273_v50  ;;  %1945 = vmatprep.subr.bf16.mxu0 %v2830_v51  ;;  %v2909_v50 = vld [vmem:[#allocation12 + $0x1f0] sm:$0xff]  }
  0x67   :  { %1118 = vxpose.xlu0.c.b16.cont [2/8] %v2710_v5, 128  ;;  %1966 = vmatpush3.bf16.msra.mxu1 %v2832_v53  ;;  %3344 = vst [vmem:[#allocation33_spill] sm:$0xff] %v2909_v50 }
  0x68   :  { %781 = vmatprep.mubr.bf16.mxu0 %v272_v49  ;;  %1967 = vmatprep.subr.bf16.mxu1 %v2834_v54  ;;  %v2906_v49 = vrot.slane %v2899_v46, %v2813_v41 }
  0x69   :  { %1102 = vxpose.xlu1.c.b16.cont [2/8] %v2717_v7, 128  ;;  %821 = vmatprep.mubr.bf16.mxu1 %v276_v55  ;;  %v2916_v55 = vld [vmem:[#allocation12 + $0x178] sm:$0xff]  }
  0x6a   :  { %1946 = vmatpush3.bf16.msra.mxu0 %v2838_v56 }
  0x6b   :  { %1119 = vxpose.xlu0.c.b16.cont [3/8] %v2724_v9, 128  ;;  %1947 = vmatprep.subr.bf16.mxu0 %v2841_v57 }
  0x6c   :  { %1968 = vmatpush3.bf16.msra.mxu1 %v2844_v58 }
  0x6d   :  { %1103 = vxpose.xlu1.c.b16.cont [3/8] %v2731_v11, 128  ;;  %1969 = vmatprep.subr.bf16.mxu1 %v2847_v59 }
  0x6e   :  { %1948 = vmatpush3.bf16.msra.mxu0 %v2850_v60 }
  0x6f   :  { %1120 = vxpose.xlu0.c.b16.cont [4/8] %v2738_v13, 128  ;;  %1949 = vmatprep.subr.bf16.mxu0 %v2854_v61 }
  0x70   :  { %1970 = vmatpush3.bf16.msra.mxu1 %v2858_v62 }
  0x71   :  { %1104 = vxpose.xlu1.c.b16.cont [4/8] %v2745_v15, 128  ;;  %1971 = vmatprep.subr.bf16.mxu1 %v2861_v63  ;;  %v2936_v63 = vld [vmem:[#allocation12 + $0x1b8] sm:$0xff]  }
  0x72   :  { %1950 = vmatpush3.bf16.msra.mxu0 %v2864_v28 }
  0x73   :  { %1121 = vxpose.xlu0.c.b16.cont [5/8] %v2752_v17, 128  ;;  %1951 = vmatprep.subr.bf16.mxu0 %v2868_v33 }
  0x74   :  { %1972 = vmatpush3.bf16.msra.mxu1 %v2872_v34  ;;  %v2928_v34 = vld [vmem:[#allocation12 + $0x138] sm:$0xff]  }
  0x75   :  { %1105 = vxpose.xlu1.c.b16.cont [5/8] %v2759_v19, 128  ;;  %1973 = vmatprep.subr.bf16.mxu1 %v2875_v36  ;;  %v2925_v36 = vld [vmem:[#allocation12 + $0x1f8] sm:$0xff]  }
  0x76   :  { %1952 = vmatpush3.bf16.msra.mxu0 %v2878_v37 }
  0x77   :  { %1122 = vxpose.xlu0.c.b16.cont [6/8] %v2766_v21, 128  ;;  %1953 = vmatprep.subr.bf16.mxu0 %v2882_v39 }
  0x78   :  { %1974 = vmatpush3.bf16.msra.mxu1 %v2886_v40  ;;  %v2920_v40 = vld [vmem:[#allocation12 + $0x1b0] sm:$0xff]  }
  0x79   :  { %1106 = vxpose.xlu1.c.b16.cont [6/8] %v2773_v23, 128  ;;  %1975 = vmatprep.subr.bf16.mxu1 %v2889_v42  ;;  %v849_v42 = vcombine.high %v2906_v49, %v2906_v49 }
  0x7a   :  { %1954 = vmatpush3.bf16.msra.mxu0 %v2892_v44 }
  0x7b   :  { %1123 = vxpose.xlu0.c.b16.cont [7/8] %v2776_v24, 128  ;;  %1955 = vmatprep.subr.bf16.mxu0 %v2896_v45 }
  0x7c   :  { %1976 = vmatpush3.bf16.msra.mxu1 %v2902_v47  ;;  %v258_v47 = vrot.slane %v2819_v43, %v2813_v41 }
  0x7d   :  { %1107 = vxpose.xlu1.c.b16.cont [7/8] %v2783_v26, 128  ;;  %1977 = vmatprep.subr.bf16.mxu1 %v2909_v50  ;;  %v871_v50 = vrot.slane %v849_v42, %v2813_v41 }
  0x7e   :  { %1956 = vmatpush3.bf16.msra.mxu0 %v2912_v52  ;;  %v274_v62 = vcombine.high %v258_v47, %v258_v47 }
  0x7f   :  { %1124 = vxpose.xlu0.c.b16.end [8/8] %v2789_v29, 128  ;;  %1957 = vmatprep.subr.bf16.mxu0 %v2916_v55  ;;  %v881_v43 = vcombine.high %v871_v50, %v871_v50 }
  0x80   :  { %1978 = vmatpush3.bf16.msra.mxu1 %v2920_v40 }
  0x81   :  { %1108 = vxpose.xlu1.c.b16.end [8/8] %v2796_v31, 128  ;;  %1979 = vmatprep.subr.bf16.mxu1 %v2925_v36 }
  0x82   :  { %1958 = vmatpush3.bf16.msra.mxu0 %v2928_v34 }
  0x83   :  { %1149 = vxpose.xlu0.c.b16.start [1/8] %v2808_v38, 128  ;;  %1987 = vmatprep.subr.bf16.mxu0 %v2694_v0 }
  0x84   :  { %1980 = vmatpush3.bf16.msra.mxu1 %v2936_v63 }
  0x85   :  { %1133 = vxpose.xlu1.c.b16.start [1/8] %v2826_v48, 128  ;;  %2009 = vmatprep.subr.bf16.mxu1 %v2696_v1 }
  0x86   :  { %782 = vmatmul.mubr.bf16.vlgmr.msra.gmra.mrb[4].mxu0 %v258_v47  ;;  %v857_v47 = vrot.slane %v2906_v49, %v2813_v41 }
  0x87   :  { %1150 = vxpose.xlu0.c.b16.cont [2/8] %v2830_v51, 128  ;;  %1988 = vmatpush3.bf16.msra.mxu0 %v2699_v2 }
  0x88   :  { %923 = vmatprep.mubr.bf16.mxu0 %v871_v50  ;;  %822 = vmatmul.mubr.bf16.vlgmr.msra.gmra.mrb[4].mxu1 %v274_v62  ;;  %v834_v62 = vcombine.high %v2899_v46, %v2899_v46 }
  0x89   :  { %1134 = vxpose.xlu1.c.b16.cont [2/8] %v2838_v56, 128  ;;  %1989 = vmatprep.subr.bf16.mxu0 %v2706_v4 }
  0x8a   :  { %2010 = vmatpush3.bf16.msra.mxu1 %v2703_v3  ;;  %963 = vmatprep.mubr.bf16.mxu1 %v881_v43  ;;  %v2978_v42 = vrot.slane %v834_v62, %v2813_v41  ;;  %v879_v62 = vcombine.high %v857_v47, %v857_v47 }
  0x8b   :  { %2011 = vmatprep.subr.bf16.mxu1 %v2710_v5  ;;  %1151 = vxpose.xlu0.c.b16.cont [3/8] %v2841_v57, 128 }
  0x8c   :  { %1990 = vmatpush3.bf16.msra.mxu0 %v2713_v6  ;;  %v850_v46 = vcombine.high %v2978_v42, %v2978_v42 }
  0x8d   :  { %1135 = vxpose.xlu1.c.b16.cont [3/8] %v2850_v60, 128  ;;  %1991 = vmatprep.subr.bf16.mxu0 %v2720_v8 }
  0x8e   :  { %2012 = vmatpush3.bf16.msra.mxu1 %v2717_v7  ;;  %v878_v43 = vrot.slane %v850_v46, %v2813_v41 }
  0x8f   :  { %2013 = vmatprep.subr.bf16.mxu1 %v2724_v9  ;;  %1152 = vxpose.xlu0.c.b16.cont [4/8] %v2854_v61, 128 }
  0x90   :  { %1992 = vmatpush3.bf16.msra.mxu0 %v2727_v10 }
  0x91   :  { %1136 = vxpose.xlu1.c.b16.cont [4/8] %v2864_v28, 128  ;;  %1993 = vmatprep.subr.bf16.mxu0 %v2734_v12 }
  0x92   :  { %2014 = vmatpush3.bf16.msra.mxu1 %v2731_v11 }
  0x93   :  { %2015 = vmatprep.subr.bf16.mxu1 %v2738_v13  ;;  %1153 = vxpose.xlu0.c.b16.cont [5/8] %v2868_v33, 128 }
  0x94   :  { %1994 = vmatpush3.bf16.msra.mxu0 %v2741_v14 }
  0x95   :  { %1137 = vxpose.xlu1.c.b16.cont [5/8] %v2878_v37, 128  ;;  %1995 = vmatprep.subr.bf16.mxu0 %v2748_v16 }
  0x96   :  { %2016 = vmatpush3.bf16.msra.mxu1 %v2745_v15 }
  0x97   :  { %2017 = vmatprep.subr.bf16.mxu1 %v2752_v17  ;;  %1154 = vxpose.xlu0.c.b16.cont [6/8] %v2882_v39, 128 }
  0x98   :  { %1996 = vmatpush3.bf16.msra.mxu0 %v2755_v18 }
  0x99   :  { %1138 = vxpose.xlu1.c.b16.cont [6/8] %v2892_v44, 128  ;;  %1997 = vmatprep.subr.bf16.mxu0 %v2762_v20 }
  0x9a   :  { %2018 = vmatpush3.bf16.msra.mxu1 %v2759_v19 }
  0x9b   :  { %2019 = vmatprep.subr.bf16.mxu1 %v2766_v21  ;;  %1155 = vxpose.xlu0.c.b16.cont [7/8] %v2896_v45, 128 }
  0x9c   :  { %1998 = vmatpush3.bf16.msra.mxu0 %v2769_v22 }
  0x9d   :  { %1139 = vxpose.xlu1.c.b16.cont [7/8] %v2912_v52, 128  ;;  %1999 = vmatprep.subr.bf16.mxu0 %v2780_v25 }
  0x9e   :  { %2020 = vmatpush3.bf16.msra.mxu1 %v2773_v23 }
  0x9f   :  { %2021 = vmatprep.subr.bf16.mxu1 %v2776_v24  ;;  %1156 = vxpose.xlu0.c.b16.end [8/8] %v2916_v55, 128 }
  0xa0   :  { %2000 = vmatpush3.bf16.msra.mxu0 %v2786_v27 }
  0xa1   :  { %1140 = vxpose.xlu1.c.b16.end [8/8] %v2928_v34, 128  ;;  %2001 = vmatprep.subr.bf16.mxu0 %v2793_v30 }
  0xa2   :  { %2022 = vmatpush3.bf16.msra.mxu1 %v2783_v26 }
  0xa3   :  { %2023 = vmatprep.subr.bf16.mxu1 %v2789_v29  ;;  %1181 = vxpose.xlu0.c.b16.start [1/8] %v2803_v35, 128  ;;  %v882_v29 = vcombine.high %v878_v43, %v878_v43 }
  0xa4   :  { %2002 = vmatpush3.bf16.msra.mxu0 %v2800_v32 }
  0xa5   :  { %1165 = vxpose.xlu1.c.b16.start [1/8] %v2832_v53, 128  ;;  %2031 = vmatprep.subr.bf16.mxu0 %v2808_v38 }
  0xa6   :  { %2024 = vmatpush3.bf16.msra.mxu1 %v2796_v31 }
  0xa7   :  { %2053 = vmatprep.subr.bf16.mxu1 %v2803_v35  ;;  %924 = vmatmul.mubr.bf16.vlgmr.msra.gmra.mrb[8].mxu0 %v857_v47 }
  0xa8   :  { %2032 = vmatpush3.bf16.msra.mxu0 %v2826_v48  ;;  %1182 = vxpose.xlu0.c.b16.cont [2/8] %v2834_v54, 128 }
  0xa9   :  { %v2994_v50 = vpop.trf.xlu0  ;;  %964 = vmatmul.mubr.bf16.vlgmr.msra.gmra.mrb[8].mxu1 %v879_v62  ;;  %2033 = vmatprep.subr.bf16.mxu0 %v2830_v51  ;;  %v3349_v62 = vld [vmem:[#allocation22_spill] sm:$0xff] }
  0xaa   :  { %2054 = vmatpush3.bf16.msra.mxu1 %v2832_v53  ;;  %1166 = vxpose.xlu1.c.b16.cont [2/8] %v2844_v58, 128 }
  0xab   :  { %v3002_v30 = vpop.trf.xlu1  ;;  %2055 = vmatprep.subr.bf16.mxu1 %v2834_v54  ;;  %1043 = vmatprep.mubr.bf16.mxu1 %v882_v29  ;;  %v3351_v29 = vld [vmem:[#allocation23_spill] sm:$0xff] }
  0xac   :  { %3345 = vst [vmem:[#allocation34_spill] sm:$0xff] %v3002_v30  ;;  %2034 = vmatpush3.bf16.msra.mxu0 %v2838_v56  ;;  %1003 = vmatprep.mubr.bf16.mxu0 %v878_v43 }
  0xad   :  { %v3005_v49 = vpop.trf.xlu0  ;;  %2035 = vmatprep.subr.bf16.mxu0 %v2841_v57  ;;  %1183 = vxpose.xlu0.c.b16.cont [3/8] %v2847_v59, 128 }
  0xae   :  { %2056 = vmatpush3.bf16.msra.mxu1 %v2844_v58  ;;  %1167 = vxpose.xlu1.c.b16.cont [3/8] %v3349_v62, 128 }
  0xaf   :  { %v3011_v46 = vpop.trf.xlu1  ;;  %2057 = vmatprep.subr.bf16.mxu1 %v2847_v59 }
  0xb0   :  { %3346 = vst [vmem:[#allocation35_spill] sm:$0xff] %v3011_v46  ;;  %2036 = vmatpush3.bf16.msra.mxu0 %v2850_v60 }
  0xb1   :  { %v3015_v30 = vpop.trf.xlu0  ;;  %2037 = vmatprep.subr.bf16.mxu0 %v2854_v61  ;;  %1184 = vxpose.xlu0.c.b16.cont [4/8] %v3351_v29, 128  ;;  %v3357_v61 = vld [vmem:[#allocation29_spill] sm:$0xff] }
  0xb2   :  { %3347 = vst [vmem:[#allocation36_spill] sm:$0xff] %v3015_v30  ;;  %2058 = vmatpush3.bf16.msra.mxu1 %v3349_v62  ;;  %v3353_v30 = vld [vmem:[#allocation26_spill] sm:$0xff] }
  0xb3   :  { %v3021_v47 = vpop.trf.xlu1  ;;  %1168 = vxpose.xlu1.c.b16.cont [4/8] %v3353_v30, 128  ;;  %2059 = vmatprep.subr.bf16.mxu1 %v3351_v29 }
  0xb4   :  { %3348 = vst [vmem:[#allocation37_spill] sm:$0xff] %v3021_v47  ;;  %2038 = vmatpush3.bf16.msra.mxu0 %v2864_v28 }
  0xb5   :  { %v3025_v46 = vpop.trf.xlu0  ;;  %2039 = vmatprep.subr.bf16.mxu0 %v2868_v33  ;;  %v3361_v33 = vld [vmem:[#allocation32_spill] sm:$0xff] }
  0xb6   :  { %3350 = vst [vmem:[#allocation22_spill] sm:$0xff] %v3025_v46  ;;  %v3355_v46 = vld [vmem:[#allocation27_spill] sm:$0xff]  ;;  %2060 = vmatpush3.bf16.msra.mxu1 %v3353_v30 }
  0xb7   :  { %v3031_v43 = vpop.trf.xlu1  ;;  %1185 = vxpose.xlu0.c.b16.cont [5/8] %v3355_v46, 128  ;;  %1169 = vxpose.xlu1.c.b16.cont [5/8] %v3357_v61, 128 }
  0xb8   :  { %3352 = vst [vmem:[#allocation23_spill] sm:$0xff] %v3031_v43  ;;  %2061 = vmatprep.subr.bf16.mxu1 %v3355_v46  ;;  %2040 = vmatpush3.bf16.msra.mxu0 %v2878_v37 }
  0xb9   :  { %v3035_v47 = vpop.trf.xlu0  ;;  %2041 = vmatprep.subr.bf16.mxu0 %v2882_v39 }
  0xba   :  { %3354 = vst [vmem:[#allocation26_spill] sm:$0xff] %v3035_v47  ;;  %v3359_v47 = vld [vmem:[#allocation30_spill] sm:$0xff]  ;;  %2062 = vmatpush3.bf16.msra.mxu1 %v3357_v61 }
  0xbb   :  { %v3041_v60 = vpop.trf.xlu1  ;;  %1186 = vxpose.xlu0.c.b16.cont [6/8] %v3359_v47, 128  ;;  %1170 = vxpose.xlu1.c.b16.cont [6/8] %v3361_v33, 128 }
  0xbc   :  { %3356 = vst [vmem:[#allocation27_spill] sm:$0xff] %v3041_v60  ;;  %2063 = vmatprep.subr.bf16.mxu1 %v3359_v47  ;;  %2042 = vmatpush3.bf16.msra.mxu0 %v2892_v44 }
  0xbd   :  { %v3045_v43 = vpop.trf.xlu0  ;;  %2043 = vmatprep.subr.bf16.mxu0 %v2896_v45 }
  0xbe   :  { %3358 = vst [vmem:[#allocation29_spill] sm:$0xff] %v3045_v43  ;;  %v3363_v43 = vld [vmem:[#allocation33_spill] sm:$0xff]  ;;  %2064 = vmatpush3.bf16.msra.mxu1 %v3361_v33 }
  0xbf   :  { %v3051_v28 = vpop.trf.xlu1  ;;  %1187 = vxpose.xlu0.c.b16.cont [7/8] %v3363_v43, 128  ;;  %1171 = vxpose.xlu1.c.b16.cont [7/8] %v2920_v40, 128 }
  0xc0   :  { %3360 = vst [vmem:[#allocation30_spill] sm:$0xff] %v3051_v28  ;;  %2065 = vmatprep.subr.bf16.mxu1 %v3363_v43  ;;  %2044 = vmatpush3.bf16.msra.mxu0 %v2912_v52 }
  0xc1   :  { %v3055_v60 = vpop.trf.xlu0  ;;  %2045 = vmatprep.subr.bf16.mxu0 %v2916_v55 }
  0xc2   :  { %3362 = vst [vmem:[#allocation32_spill] sm:$0xff] %v3055_v60  ;;  %v864_v60 = vrot.slane %v2978_v42, %v2813_v41  ;;  %2066 = vmatpush3.bf16.msra.mxu1 %v2920_v40 }
  0xc3   :  { %v3061_v37 = vpop.trf.xlu1  ;;  %1188 = vxpose.xlu0.c.b16.end [8/8] %v2925_v36, 128  ;;  %1172 = vxpose.xlu1.c.b16.end [8/8] %v2936_v63, 128 }
  0xc4   :  { %3364 = vst [vmem:[#allocation33_spill] sm:$0xff] %v3061_v37  ;;  %2067 = vmatprep.subr.bf16.mxu1 %v2925_v36  ;;  %2046 = vmatpush3.bf16.msra.mxu0 %v2928_v34  ;;  %v880_v37 = vcombine.high %v864_v60, %v864_v60 }
  0xc5   :  { %v3067_v28 = vpop.trf.xlu0  ;;  %2075 = vmatprep.subr.bf16.mxu0 %v2694_v0 }
  0xc6   :  { %3365 = vst [vmem:[#allocation38_spill] sm:$0xff] %v3067_v28  ;;  %2068 = vmatpush3.bf16.msra.mxu1 %v2936_v63 }
  0xc7   :  { %v3073_v45 = vpop.trf.xlu1  ;;  %2139 = vmatprep.subr.bf16.mxu1 %v2696_v1  ;;  %1004 = vmatmul.mubr.bf16.vlgmr.msra.gmra.mrb[12].mxu0 %v864_v60 }
  0xc8   :  { %2076 = vmatpush3.bf16.msra.mxu0 %v2699_v2  ;;  %1229 = vmatprep.mubr.bf16.mxu0 %v2994_v50 }
  0xc9   :  { %v1125_v28 = vpop.trf.xlu0  ;;  %1044 = vmatmul.mubr.bf16.vlgmr.msra.gmra.mrb[12].mxu1 %v880_v37  ;;  %2077 = vmatprep.subr.bf16.mxu0 %v2706_v4 }
  0xca   :  { %2140 = vmatpush3.bf16.msra.mxu1 %v2703_v3  ;;  %1326 = vmatprep.mubr.bf16.mxu1 %v1125_v28  ;;  %v3384_v28 = vld [vmem:[#allocation32_spill] sm:$0xff] }
  0xcb   :  { %v1109_v41 = vpop.trf.xlu1  ;;  %2141 = vmatprep.subr.bf16.mxu1 %v2710_v5 }
  0xcc   :  { %2078 = vmatpush3.bf16.msra.mxu0 %v2713_v6  ;;  %v2606_v6 = vmov 0.0  }
  0xcd   :  { %v1126_v42 = vpop.trf.xlu0  ;;  %2079 = vmatprep.subr.bf16.mxu0 %v2720_v8  ;;  %77 = vst [vmem:[#allocation2] sm:$0x3] %v2606_v6  ;;  %78 = vst [vmem:[#allocation3] sm:$0x3] %v2606_v6 }
  0xce   :  { %2142 = vmatpush3.bf16.msra.mxu1 %v2717_v7  ;;  %96 = vst.msk [vmem:[#allocation13] sm:$0x1] %vm95_vm4, %v2606_v6 }
  0xcf   :  { %v1110_v0 = vpop.trf.xlu1  ;;  %2143 = vmatprep.subr.bf16.mxu1 %v2724_v9  ;;  %v3366_v9 = vld [vmem:[#allocation19_spill] sm:$0xff] }
  0xd0   :  { %2080 = vmatpush3.bf16.msra.mxu0 %v2727_v10  ;;  %v3367_v10 = vld [vmem:[#allocation18_spill] sm:$0xff] }
  0xd1   :  { %v1127_v1 = vpop.trf.xlu0  ;;  %2081 = vmatprep.subr.bf16.mxu0 %v2734_v12 }
  0xd2   :  { %2144 = vmatpush3.bf16.msra.mxu1 %v2731_v11 }
  0xd3   :  { %v3094_v2 = vpop.trf.xlu1  ;;  %2145 = vmatprep.subr.bf16.mxu1 %v2738_v13  ;;  %v3368_v13 = vld [vmem:[#allocation34_spill] sm:$0xff] }
  0xd4   :  { %2082 = vmatpush3.bf16.msra.mxu0 %v2741_v14 }
  0xd5   :  { %v3096_v3 = vpop.trf.xlu0  ;;  %2083 = vmatprep.subr.bf16.mxu0 %v2748_v16  ;;  %v3369_v16 = vld [vmem:[#allocation35_spill] sm:$0xff] }
  0xd6   :  { %2146 = vmatpush3.bf16.msra.mxu1 %v2745_v15 }
  0xd7   :  { %2147 = vmatprep.subr.bf16.mxu1 %v2752_v17  ;;  %v3106_v5 = vpop.trf.xlu1 }
  0xd8   :  { %2084 = vmatpush3.bf16.msra.mxu0 %v2755_v18  ;;  %v3370_v18 = vld [vmem:[#allocation36_spill] sm:$0xff] }
  0xd9   :  { %v3103_v4 = vpop.trf.xlu0  ;;  %2085 = vmatprep.subr.bf16.mxu0 %v2762_v20 }
  0xda   :  { %2148 = vmatpush3.bf16.msra.mxu1 %v2759_v19  ;;  %v3371_v19 = vld [vmem:[#allocation20_spill] sm:$0xff] }
  0xdb   :  { %2149 = vmatprep.subr.bf16.mxu1 %v2766_v21  ;;  %v3118_v8 = vpop.trf.xlu1  ;;  %v3372_v21 = vld [vmem:[#allocation21_spill] sm:$0xff] }
  0xdc   :  { %2086 = vmatpush3.bf16.msra.mxu0 %v2769_v22  ;;  %v3373_v22 = vld [vmem:[#allocation24_spill] sm:$0xff] }
  0xdd   :  { %2087 = vmatprep.subr.bf16.mxu0 %v2780_v25  ;;  %v3115_v7 = vpop.trf.xlu0 }
  0xde   :  { %2150 = vmatpush3.bf16.msra.mxu1 %v2773_v23 }
  0xdf   :  { %2151 = vmatprep.subr.bf16.mxu1 %v2776_v24  ;;  %v3128_v12 = vpop.trf.xlu1  ;;  %v3374_v24 = vld [vmem:[#allocation25_spill] sm:$0xff] }
  0xe0   :  { %2088 = vmatpush3.bf16.msra.mxu0 %v2786_v27  ;;  %v3376_v27 = vld [vmem:[#allocation22_spill] sm:$0xff] }
  0xe1   :  { %2089 = vmatprep.subr.bf16.mxu0 %v3366_v9  ;;  %v3125_v11 = vpop.trf.xlu0 }
  0xe2   :  { %2152 = vmatpush3.bf16.msra.mxu1 %v2783_v26  ;;  %v3375_v26 = vld [vmem:[#allocation37_spill] sm:$0xff] }
  0xe3   :  { %2153 = vmatprep.subr.bf16.mxu1 %v3367_v10  ;;  %v3140_v15 = vpop.trf.xlu1 }
  0xe4   :  { %2090 = vmatpush3.bf16.msra.mxu0 %v2800_v32 }
  0xe5   :  { %2203 = vmatprep.subr.bf16.mxu0 %v2808_v38  ;;  %v3137_v14 = vpop.trf.xlu0  ;;  %v3379_v38 = vld [vmem:[#allocation23_spill] sm:$0xff] }
  0xe6   :  { %2154 = vmatpush3.bf16.msra.mxu1 %v2796_v31  ;;  %v3377_v31 = vld [vmem:[#allocation28_spill] sm:$0xff] }
  0xe7   :  { %1230 = vmatmul.mubr.bf16.vlgmr.msra.gmra.mrb[16].mxu0 %v3368_v13  ;;  %2267 = vmatprep.subr.bf16.mxu1 %v2803_v35  ;;  %v1116_v20 = vpop.trf.xlu1  ;;  %v3378_v35 = vld [vmem:[#allocation31_spill] sm:$0xff] }
  0xe8   :  { %1237 = vmatprep.mubr.bf16.mxu0 %v3005_v49  ;;  %2204 = vmatpush3.bf16.msra.mxu0 %v2826_v48  ;;  %v3380_v48 = vld [vmem:[#allocation26_spill] sm:$0xff] }
  0xe9   :  { %1327 = vmatmul.mubr.bf16.vlgmr.msra.gmra.mrb[16].mxu1 %v1109_v41  ;;  %2205 = vmatprep.subr.bf16.mxu0 %v2830_v51  ;;  %v1157_v17 = vpop.trf.xlu0 }
  0xea   :  { %1334 = vmatprep.mubr.bf16.mxu1 %v1126_v42  ;;  %2268 = vmatpush3.bf16.msra.mxu1 %v2832_v53 }
  0xeb   :  { %2269 = vmatprep.subr.bf16.mxu1 %v2834_v54  ;;  %v1141_v25 = vpop.trf.xlu1  ;;  %v3381_v54 = vld [vmem:[#allocation27_spill] sm:$0xff] }
  0xec   :  { %2206 = vmatpush3.bf16.msra.mxu0 %v2838_v56 }
  0xed   :  { %2207 = vmatprep.subr.bf16.mxu0 %v2841_v57  ;;  %v1158_v23 = vpop.trf.xlu0  ;;  %v3382_v57 = vld [vmem:[#allocation29_spill] sm:$0xff] }
  0xee   :  { %2270 = vmatpush3.bf16.msra.mxu1 %v2844_v58 }
  0xef   :  { %1238 = vmatmul.mubr.bf16.gmra.mrb[20].mxu0 %v3369_v16  ;;  %2271 = vmatprep.subr.bf16.mxu1 %v2847_v59 }
  0xf0   :  { %1245 = vmatprep.mubr.bf16.mxu0 %v3370_v18  ;;  %2208 = vmatpush3.bf16.msra.mxu0 %v3371_v19 }
  0xf1   :  { %1335 = vmatmul.mubr.bf16.gmra.mrb[20].mxu1 %v1110_v0  ;;  %2209 = vmatprep.subr.bf16.mxu0 %v3372_v21  ;;  %v1159_v32 = vpop.trf.xlu0 }
  0xf2   :  { %1342 = vmatprep.mubr.bf16.mxu1 %v1127_v1  ;;  %2272 = vmatpush3.bf16.msra.mxu1 %v3349_v62 }
  0xf3   :  { %2273 = vmatprep.subr.bf16.mxu1 %v3351_v29 }
  0xf4   :  { %2210 = vmatpush3.bf16.msra.mxu0 %v3373_v22 }
  0xf5   :  { %2211 = vmatprep.subr.bf16.mxu0 %v3374_v24  ;;  %v1160_v51 = vpop.trf.xlu0 }
  0xf6   :  { %2274 = vmatpush3.bf16.msra.mxu1 %v3353_v30  ;;  %v1142_v30 = vpop.trf.xlu1 }
  0xf7   :  { %1246 = vmatmul.mubr.bf16.gmra.mrb[24].mxu0 %v3375_v26  ;;  %2275 = vmatprep.subr.bf16.mxu1 %v3355_v46 }
  0xf8   :  { %1253 = vmatprep.mubr.bf16.mxu0 %v3376_v27  ;;  %2212 = vmatpush3.bf16.msra.mxu0 %v3377_v31 }
  0xf9   :  { %1343 = vmatmul.mubr.bf16.gmra.mrb[24].mxu1 %v3094_v2  ;;  %2213 = vmatprep.subr.bf16.mxu0 %v2882_v39  ;;  %v1161_v56 = vpop.trf.xlu0 }
  0xfa   :  { %1350 = vmatprep.mubr.bf16.mxu1 %v3096_v3  ;;  %2276 = vmatpush3.bf16.msra.mxu1 %v3357_v61  ;;  %v1143_v53 = vpop.trf.xlu1  ;;  %v3383_v61 = vld [vmem:[#allocation30_spill] sm:$0xff] }
  0xfb   :  { %2277 = vmatprep.subr.bf16.mxu1 %v3359_v47 }
  0xfc   :  { %2214 = vmatpush3.bf16.msra.mxu0 %v2892_v44 }
  0xfd   :  { %2215 = vmatprep.subr.bf16.mxu0 %v3378_v35  ;;  %v1162_v59 = vpop.trf.xlu0 }
  0xfe   :  { %2278 = vmatpush3.bf16.msra.mxu1 %v3361_v33  ;;  %v1144_v58 = vpop.trf.xlu1 }
  0xff   :  { %1254 = vmatmul.mubr.bf16.gmra.mrb[28].mxu0 %v3379_v38  ;;  %2279 = vmatprep.subr.bf16.mxu1 %v3363_v43 }
 0x100   :  { %1261 = vmatprep.mubr.bf16.mxu0 %v3380_v48  ;;  %2216 = vmatpush3.bf16.msra.mxu0 %v2912_v52 }
 0x101   :  { %1351 = vmatmul.mubr.bf16.gmra.mrb[28].mxu1 %v3106_v5  ;;  %2217 = vmatprep.subr.bf16.mxu0 %v2916_v55 }
 0x102   :  { %1358 = vmatprep.mubr.bf16.mxu1 %v3103_v4  ;;  %2280 = vmatpush3.bf16.msra.mxu1 %v2920_v40  ;;  %v1145_v60 = vpop.trf.xlu1 }
 0x103   :  { %2281 = vmatprep.subr.bf16.mxu1 %v2925_v36  ;;  %v3386_v36 = vld [vmem:[#allocation38_spill] sm:$0xff] }
 0x104   :  { %2218 = vmatpush3.bf16.msra.mxu0 %v2928_v34  ;;  %v3385_v34 = vld [vmem:[#allocation33_spill] sm:$0xff] }
 0x106   :  { %2282 = vmatpush3.bf16.msra.mxu1 %v2936_v63  ;;  %v1163_v63 = vpop.trf.xlu0  ;;  %v1146_v33 = vpop.trf.xlu1 }
 0x107   :  { %1262 = vmatmul.mubr.bf16.gmra.mrb[32].mxu0 %v3381_v54 }
 0x108   :  { %1269 = vmatprep.mubr.bf16.mxu0 %v3382_v57 }
 0x109   :  { %1359 = vmatmul.mubr.bf16.gmra.mrb[32].mxu1 %v3118_v8 }
 0x10a   :  { %1366 = vmatprep.mubr.bf16.mxu1 %v3115_v7  ;;  %v1164_v37 = vpop.trf.xlu0  ;;  %v1147_v39 = vpop.trf.xlu1 }
 0x10e   :  { %v1189_v40 = vpop.trf.xlu0  ;;  %v3192_v44 = vpop.trf.xlu1 }
 0x10f   :  { %1270 = vmatmul.mubr.bf16.gmra.mrb[36].mxu0 %v3383_v61 }
 0x110   :  { %1277 = vmatprep.mubr.bf16.mxu0 %v3384_v28 }
 0x111   :  { %1367 = vmatmul.mubr.bf16.gmra.mrb[36].mxu1 %v3128_v12 }
 0x112   :  { %1374 = vmatprep.mubr.bf16.mxu1 %v3125_v11  ;;  %v1173_v52 = vpop.trf.xlu1  ;;  %v1190_v55 = vpop.trf.xlu0 }
 0x116   :  { %v1174_v50 = vpop.trf.xlu1  ;;  %v1191_v49 = vpop.trf.xlu0 }
 0x117   :  { %1278 = vmatmul.mubr.bf16.gmra.mrb[40].mxu0 %v3385_v34 }
 0x118   :  { %1285 = vmatprep.mubr.bf16.mxu0 %v3386_v36 }
 0x119   :  { %1375 = vmatmul.mubr.bf16.gmra.mrb[40].mxu1 %v3140_v15 }
 0x11a   :  { %1382 = vmatprep.mubr.bf16.mxu1 %v3137_v14  ;;  %v1175_v46 = vpop.trf.xlu1 }
 0x11e   :  { %v1176_v3 = vpop.trf.xlu1 }
 0x11f   :  { %1286 = vmatmul.mubr.bf16.gmra.mrb[44].mxu0 %v3073_v45  ;;  %v1192_v45 = vpop.trf.xlu0 }
 0x120   :  { %1423 = vmatprep.mubr.bf16.mxu0 %v1157_v17 }
 0x121   :  { %1383 = vmatmul.mubr.bf16.gmra.mrb[44].mxu1 %v1116_v20 }
 0x122   :  { %1520 = vmatprep.mubr.bf16.mxu1 %v1189_v40  ;;  %v1177_v8 = vpop.trf.xlu1  ;;  %v2607_v40 = vmov 0.0|0.0  }
 0x123   :  { %v1193_v5 = vpop.trf.xlu0  ;;  %2383 = vmatprep.subr.bf16.mxu0 %v2607_v40 }
 0x126   :  { %v1178_v10 = vpop.trf.xlu1 }
 0x127   :  { %1424 = vmatmul.mubr.bf16.vlgmr.msra.gmra.mrb[48].mxu0 %v1141_v25  ;;  %v1194_v9 = vpop.trf.xlu0  ;;  %v225_v25 = vld [vmem:[#allocation2] sm:$0x3] }
 0x128   :  { %1431 = vmatprep.mubr.bf16.mxu0 %v1158_v23 }
 0x129   :  { %1521 = vmatmul.mubr.bf16.vlgmr.msra.gmra.mrb[48].mxu1 %v1173_v52 }
 0x12a   :  { %1528 = vmatprep.mubr.bf16.mxu1 %v1190_v55  ;;  %v1179_v12 = vpop.trf.xlu1 }
 0x12b   :  { %v1195_v11 = vpop.trf.xlu0 }
 0x12e   :  { %v1180_v24 = vpop.trf.xlu1 }
 0x12f   :  { %1432 = vmatmul.mubr.bf16.gmra.mrb[52].mxu0 %v1142_v30  ;;  %v1196_v13 = vpop.trf.xlu0  ;;  %v1897_v30 = vld [vmem:[%s3302_s4] ss:$0 sm:$0xff]  ;;  %s1896_s4 = sld [smem:[#allocation5 + $0x1]] }
 0x130   :  { %1439 = vmatprep.mubr.bf16.mxu0 %v1159_v32  ;;  %v1625_v32 = vstv %s3195_s3 }
 0x131   :  { %1529 = vmatmul.mubr.bf16.gmra.mrb[52].mxu1 %v1174_v50 }
 0x132   :  { %1536 = vmatprep.mubr.bf16.mxu1 %v1191_v49 }
 0x137   :  { %1440 = vmatmul.mubr.bf16.gmra.mrb[56].mxu0 %v1143_v53  ;;  %v1915_v47 = vpop.f32.mrb[0].mxu0 }
 0x138   :  { %1447 = vmatprep.mubr.bf16.mxu0 %v1160_v51  ;;  %v1916_v62 = vpop.f32.mrb[1].mxu0  ;;  %v3206_v51 = vld [vmem:[%s3303_s5] ss:$0 sm:$0xff]  ;;  %s1807_s5 = smul.f32 %s3195_s3, %s3195_s3 }
 0x139   :  { %1537 = vmatmul.mubr.bf16.gmra.mrb[56].mxu1 %v1175_v46  ;;  %v1937_v29 = vpop.f32.mrb[0].mxu1  ;;  %v1917_v43 = vadd.f32 %v1916_v62, %v1915_v47  ;;  %v1918_v41 = vpop.f32.mrb[2].mxu0 }
 0x13a   :  { %1544 = vmatprep.mubr.bf16.mxu1 %v1192_v45  ;;  %v1938_v42 = vpop.f32.mrb[1].mxu1  ;;  %v1919_v0 = vpop.f32.mrb[3].mxu0  ;;  %s1808_s21 = smul.f32 5.0, %s1807_s5 }
 0x13b   :  { %v1939_v1 = vadd.f32 %v1938_v42, %v1937_v29  ;;  %v1940_v2 = vpop.f32.mrb[2].mxu1 }
 0x13c   :  { %v1941_v4 = vpop.f32.mrb[3].mxu1  ;;  %s1809_s22 = smul.f32 0.5, %s1808_s21 }
 0x13d   :  { %v744_v7 = vadd.f32 %v1939_v1, %v1917_v43  ;;  %v831_v43 = vld [vmem:[#allocation3] sm:$0x3] }
 0x13f   :  { %1448 = vmatmul.mubr.bf16.gmra.mrb[60].mxu0 %v1144_v58 }
 0x140   :  { %1455 = vmatprep.mubr.bf16.mxu0 %v1161_v56 }
 0x141   :  { %1545 = vmatmul.mubr.bf16.gmra.mrb[60].mxu1 %v1176_v3 }
 0x142   :  { %1552 = vmatprep.mubr.bf16.mxu1 %v1193_v5 }
 0x147   :  { %1456 = vmatmul.mubr.bf16.gmra.mrb[64].mxu0 %v1145_v60 }
 0x148   :  { %1463 = vmatprep.mubr.bf16.mxu0 %v1162_v59 }
 0x149   :  { %1553 = vmatmul.mubr.bf16.gmra.mrb[64].mxu1 %v1177_v8 }
 0x14a   :  { %1560 = vmatprep.mubr.bf16.mxu1 %v1194_v9 }
 0x14f   :  { %1464 = vmatmul.mubr.bf16.gmra.mrb[68].mxu0 %v1146_v33 }
 0x150   :  { %1471 = vmatprep.mubr.bf16.mxu0 %v1163_v63 }
 0x151   :  { %1561 = vmatmul.mubr.bf16.gmra.mrb[68].mxu1 %v1178_v10 }
 0x152   :  { %1568 = vmatprep.mubr.bf16.mxu1 %v1195_v11 }
 0x157   :  { %1472 = vmatmul.mubr.bf16.gmra.mrb[72].mxu0 %v1147_v39 }
 0x158   :  { %1479 = vmatprep.mubr.bf16.mxu0 %v1164_v37 }
 0x159   :  { %1569 = vmatmul.mubr.bf16.gmra.mrb[72].mxu1 %v1179_v12  ;;  %v1959_v14 = vpop.f32.mrb[4].mxu0 }
 0x15a   :  { %1576 = vmatprep.mubr.bf16.mxu1 %v1196_v13  ;;  %v1960_v15 = vpop.f32.mrb[5].mxu0 }
 0x15b   :  { %v1981_v16 = vpop.f32.mrb[4].mxu1  ;;  %v1961_v17 = vadd.f32 %v1960_v15, %v1959_v14  ;;  %v1962_v18 = vpop.f32.mrb[6].mxu0 }
 0x15c   :  { %v1982_v19 = vpop.f32.mrb[5].mxu1  ;;  %v1963_v20 = vpop.f32.mrb[7].mxu0 }
 0x15d   :  { %v784_v21 = vadd.f32 %v1961_v17, %v744_v7  ;;  %v1983_v22 = vadd.f32 %v1982_v19, %v1981_v16  ;;  %v1984_v23 = vpop.f32.mrb[6].mxu1 }
 0x15e   :  { %v1985_v26 = vpop.f32.mrb[7].mxu1 }
 0x15f   :  { %1480 = vmatmul.mubr.bf16.gmra.mrb[76].mxu0 %v3192_v44  ;;  %v824_v27 = vadd.f32 %v1983_v22, %v784_v21 }
 0x160   :  { %2380 = vmatprep.mubr.msk.f32.mxu0 %vm2608_vm3, %v2606_v6 }
 0x161   :  { %1577 = vmatmul.mubr.bf16.gmra.mrb[76].mxu1 %v1180_v24  ;;  %v829_v31 = vadd.f32 %v824_v27, %v225_v25 }
 0x163   :  { %830 = vst [vmem:[#allocation2] sm:$0x3] %v829_v31 }
 0x16a   :  { %v1624_v35 = vld [vmem:[#allocation2] sm:$0x3] }
 0x16b   :  { %v1626_v38 = vmul.f32 %v1625_v32, %v1624_v35 }
 0x16d   :  { %v3201_v48 = vadd.f32 %v1897_v30, %v1626_v38 }
 0x16f   :  { %vm1637_vm0 = vcmp.gt.f32.partialorder %v3201_v48, 0.0  ;;  %v1638_v53 = vmul.f32 0.2, %v3201_v48 }
 0x171   :  { %v1639_v54 = vsel %vm1637_vm0, %v3201_v48, %v1638_v53 }
 0x172   :  { %v1649_v56 = vmul.f32 %v3206_v51, %v1639_v54 }
 0x174   :  { %v1651_v57 = vsel %vm1650_vm1, %v1649_v56, 0.0 }
 0x175   :  { %1652 = vadd.xlane.f32.xlu0 %v1651_v57 }
 0x17a   :  { %v2003_v58 = vpop.f32.mrb[8].mxu0 }
 0x17b   :  { %v2004_v59 = vpop.f32.mrb[9].mxu0 }
 0x17c   :  { %v2025_v60 = vpop.f32.mrb[8].mxu1  ;;  %v2005_v61 = vadd.f32 %v2004_v59, %v2003_v58  ;;  %v2006_v28 = vpop.f32.mrb[10].mxu0 }
 0x17d   :  { %v2026_v63 = vpop.f32.mrb[9].mxu1  ;;  %v2007_v33 = vpop.f32.mrb[11].mxu0 }
 0x17e   :  { %v2027_v34 = vadd.f32 %v2026_v63, %v2025_v60  ;;  %v2028_v36 = vpop.f32.mrb[10].mxu1 }
 0x17f   :  { %v2029_v37 = vpop.f32.mrb[11].mxu1 }
 0x180   :  { %v966_v39 = vadd.f32 %v2027_v34, %v2005_v61 }
 0x19a   :  { %v2047_v44 = vpop.f32.mrb[12].mxu0 }
 0x19b   :  { %v2048_v52 = vpop.f32.mrb[13].mxu0 }
 0x19c   :  { %v2069_v55 = vpop.f32.mrb[12].mxu1  ;;  %v2049_v50 = vadd.f32 %v2048_v52, %v2047_v44  ;;  %v2050_v49 = vpop.f32.mrb[14].mxu0 }
 0x19d   :  { %v2070_v46 = vpop.f32.mrb[13].mxu1  ;;  %v2051_v45 = vpop.f32.mrb[15].mxu0 }
 0x19e   :  { %v1006_v47 = vadd.f32 %v2049_v50, %v966_v39  ;;  %v2071_v62 = vadd.f32 %v2070_v46, %v2069_v55  ;;  %v2072_v29 = vpop.f32.mrb[14].mxu1 }
 0x19f   :  { %v2073_v41 = vpop.f32.mrb[15].mxu1 }
 0x1a0   :  { %v1046_v42 = vadd.f32 %v2071_v62, %v1006_v47 }
 0x1a2   :  { %v1051_v0 = vadd.f32 %v1046_v42, %v831_v43 }
 0x1a4   :  { %1052 = vst [vmem:[#allocation3] sm:$0x3] %v1051_v0 }
 0x1ab   :  { %v1634_v1 = vld [vmem:[#allocation3] sm:$0x3] }
 0x1ac   :  { %v1635_v2 = vmul.f32 %v1634_v1, %v1625_v32 }
 0x1ae   :  { %v1636_v3 = vadd.f32 %v1897_v30, %v1635_v2 }
 0x1b0   :  { %vm1640_vm2 = vcmp.gt.f32.partialorder %v1636_v3, 0.0  ;;  %v1641_v4 = vmul.f32 0.2, %v1636_v3 }
 0x1b2   :  { %v1642_v5 = vsel %vm1640_vm2, %v1636_v3, %v1641_v4 }
 0x1b3   :  { %v1656_v7 = vmul.f32 %v3206_v51, %v1642_v5 }
 0x1b5   :  { %v1657_v8 = vsel %vm1650_vm1, %v1656_v7, 0.0 }
 0x1b6   :  { %1658 = vadd.xlane.f32.xlu1 %v1657_v8 }
 0x1ba   :  { %v2091_v9 = vpop.f32.mrb[16].mxu0 }
 0x1bb   :  { %v2092_v10 = vpop.f32.mrb[17].mxu0 }
 0x1bc   :  { %v2155_v11 = vpop.f32.mrb[16].mxu1  ;;  %v2093_v12 = vadd.f32 %v2092_v10, %v2091_v9  ;;  %v2094_v13 = vpop.f32.mrb[18].mxu0 }
 0x1bd   :  { %v2156_v14 = vpop.f32.mrb[17].mxu1  ;;  %v2095_v15 = vpop.f32.mrb[19].mxu0 }
 0x1be   :  { %v2157_v16 = vadd.f32 %v2156_v14, %v2155_v11  ;;  %v2158_v17 = vpop.f32.mrb[18].mxu1  ;;  %v2096_v18 = vadd.f32 %v2095_v15, %v2094_v13 }
 0x1bf   :  { %v2159_v19 = vpop.f32.mrb[19].mxu1 }
 0x1c0   :  { %v3219_v20 = vadd.f32 %v2157_v16, %v2093_v12  ;;  %v2160_v21 = vadd.f32 %v2159_v19, %v2158_v17 }
 0x1c2   :  { %v3221_v22 = vadd.f32 %v2160_v21, %v2096_v18  ;;  %v2097_v23 = vpop.f32.mrb[20].mxu0 }
 0x1c3   :  { %v2098_v24 = vpop.f32.mrb[21].mxu0 }
 0x1c4   :  { %v2161_v25 = vpop.f32.mrb[20].mxu1  ;;  %v2099_v26 = vadd.f32 %v2098_v24, %v2097_v23  ;;  %v2100_v27 = vpop.f32.mrb[22].mxu0 }
 0x1c5   :  { %v2162_v31 = vpop.f32.mrb[21].mxu1  ;;  %v2101_v32 = vpop.f32.mrb[23].mxu0 }
 0x1c6   :  { %v2163_v30 = vadd.f32 %v2162_v31, %v2161_v25  ;;  %v2164_v35 = vpop.f32.mrb[22].mxu1  ;;  %v2102_v38 = vadd.f32 %v2101_v32, %v2100_v27 }
 0x1c7   :  { %v2165_v53 = vpop.f32.mrb[23].mxu1 }
 0x1c8   :  { %v3223_v54 = vadd.f32 %v2163_v30, %v2099_v26  ;;  %v2166_v56 = vadd.f32 %v2165_v53, %v2164_v35 }
 0x1ca   :  { %v3225_v57 = vadd.f32 %v2166_v56, %v2102_v38  ;;  %v2103_v58 = vpop.f32.mrb[24].mxu0 }
 0x1cb   :  { %v2104_v59 = vpop.f32.mrb[25].mxu0 }
 0x1cc   :  { %v2167_v60 = vpop.f32.mrb[24].mxu1  ;;  %v2105_v61 = vadd.f32 %v2104_v59, %v2103_v58  ;;  %v2106_v28 = vpop.f32.mrb[26].mxu0 }
 0x1cd   :  { %v2168_v63 = vpop.f32.mrb[25].mxu1  ;;  %v2107_v33 = vpop.f32.mrb[27].mxu0 }
 0x1ce   :  { %v2169_v34 = vadd.f32 %v2168_v63, %v2167_v60  ;;  %v2170_v36 = vpop.f32.mrb[26].mxu1  ;;  %v2108_v37 = vadd.f32 %v2107_v33, %v2106_v28 }
 0x1cf   :  { %v2171_v39 = vpop.f32.mrb[27].mxu1 }
 0x1d0   :  { %v3227_v44 = vadd.f32 %v2169_v34, %v2105_v61  ;;  %v2172_v52 = vadd.f32 %v2171_v39, %v2170_v36 }
 0x1d2   :  { %v3229_v55 = vadd.f32 %v2172_v52, %v2108_v37  ;;  %v2109_v50 = vpop.f32.mrb[28].mxu0 }
 0x1d3   :  { %v2110_v49 = vpop.f32.mrb[29].mxu0 }
 0x1d4   :  { %v2173_v46 = vpop.f32.mrb[28].mxu1  ;;  %v2111_v45 = vadd.f32 %v2110_v49, %v2109_v50  ;;  %v2112_v47 = vpop.f32.mrb[30].mxu0 }
 0x1d5   :  { %v2174_v62 = vpop.f32.mrb[29].mxu1  ;;  %v2113_v29 = vpop.f32.mrb[31].mxu0 }
 0x1d6   :  { %v2175_v43 = vadd.f32 %v2174_v62, %v2173_v46  ;;  %v2176_v41 = vpop.f32.mrb[30].mxu1  ;;  %v2114_v42 = vadd.f32 %v2113_v29, %v2112_v47 }
 0x1d7   :  { %v2177_v0 = vpop.f32.mrb[31].mxu1 }
 0x1d8   :  { %v3231_v1 = vadd.f32 %v2175_v43, %v2111_v45  ;;  %v2178_v2 = vadd.f32 %v2177_v0, %v2176_v41 }
 0x1da   :  { %v3233_v3 = vadd.f32 %v2178_v2, %v2114_v42  ;;  %v2115_v4 = vpop.f32.mrb[32].mxu0 }
 0x1db   :  { %v2116_v5 = vpop.f32.mrb[33].mxu0 }
 0x1dc   :  { %v2179_v7 = vpop.f32.mrb[32].mxu1  ;;  %v2117_v8 = vadd.f32 %v2116_v5, %v2115_v4  ;;  %v2118_v9 = vpop.f32.mrb[34].mxu0 }
 0x1dd   :  { %v2180_v10 = vpop.f32.mrb[33].mxu1  ;;  %v2119_v11 = vpop.f32.mrb[35].mxu0 }
 0x1de   :  { %v2181_v12 = vadd.f32 %v2180_v10, %v2179_v7  ;;  %v2182_v13 = vpop.f32.mrb[34].mxu1  ;;  %v2120_v14 = vadd.f32 %v2119_v11, %v2118_v9 }
 0x1df   :  { %v2183_v15 = vpop.f32.mrb[35].mxu1 }
 0x1e0   :  { %v3235_v16 = vadd.f32 %v2181_v12, %v2117_v8  ;;  %v2184_v17 = vadd.f32 %v2183_v15, %v2182_v13 }
 0x1e2   :  { %v3237_v18 = vadd.f32 %v2184_v17, %v2120_v14  ;;  %v2121_v19 = vpop.f32.mrb[36].mxu0 }
 0x1e3   :  { %v2122_v21 = vpop.f32.mrb[37].mxu0 }
 0x1e4   :  { %v2185_v23 = vpop.f32.mrb[36].mxu1  ;;  %v2123_v24 = vadd.f32 %v2122_v21, %v2121_v19  ;;  %v2124_v25 = vpop.f32.mrb[38].mxu0 }
 0x1e5   :  { %v2186_v26 = vpop.f32.mrb[37].mxu1  ;;  %v2125_v27 = vpop.f32.mrb[39].mxu0 }
 0x1e6   :  { %v2187_v31 = vadd.f32 %v2186_v26, %v2185_v23  ;;  %v2188_v32 = vpop.f32.mrb[38].mxu1  ;;  %v2126_v30 = vadd.f32 %v2125_v27, %v2124_v25 }
 0x1e7   :  { %v2189_v35 = vpop.f32.mrb[39].mxu1 }
 0x1e8   :  { %v3239_v38 = vadd.f32 %v2187_v31, %v2123_v24  ;;  %v2190_v53 = vadd.f32 %v2189_v35, %v2188_v32 }
 0x1ea   :  { %v3241_v56 = vadd.f32 %v2190_v53, %v2126_v30  ;;  %v2127_v58 = vpop.f32.mrb[40].mxu0 }
 0x1eb   :  { %v2128_v59 = vpop.f32.mrb[41].mxu0 }
 0x1ec   :  { %v2191_v60 = vpop.f32.mrb[40].mxu1  ;;  %v2129_v61 = vadd.f32 %v2128_v59, %v2127_v58  ;;  %v2130_v28 = vpop.f32.mrb[42].mxu0 }
 0x1ed   :  { %v2192_v63 = vpop.f32.mrb[41].mxu1  ;;  %v2131_v33 = vpop.f32.mrb[43].mxu0 }
 0x1ee   :  { %v2193_v34 = vadd.f32 %v2192_v63, %v2191_v60  ;;  %v2194_v36 = vpop.f32.mrb[42].mxu1  ;;  %v2132_v37 = vadd.f32 %v2131_v33, %v2130_v28 }
 0x1ef   :  { %v2195_v39 = vpop.f32.mrb[43].mxu1 }
 0x1f0   :  { %v3243_v52 = vadd.f32 %v2193_v34, %v2129_v61  ;;  %v2196_v50 = vadd.f32 %v2195_v39, %v2194_v36 }
 0x1f2   :  { %v3245_v49 = vadd.f32 %v2196_v50, %v2132_v37  ;;  %v2133_v46 = vpop.f32.mrb[44].mxu0 }
 0x1f3   :  { %v2134_v45 = vpop.f32.mrb[45].mxu0 }
 0x1f4   :  { %v2197_v47 = vpop.f32.mrb[44].mxu1  ;;  %v2135_v62 = vadd.f32 %v2134_v45, %v2133_v46  ;;  %v2136_v29 = vpop.f32.mrb[46].mxu0 }
 0x1f5   :  { %v2198_v43 = vpop.f32.mrb[45].mxu1  ;;  %v2137_v41 = vpop.f32.mrb[47].mxu0 }
 0x1f6   :  { %v2199_v42 = vadd.f32 %v2198_v43, %v2197_v47  ;;  %v2200_v0 = vpop.f32.mrb[46].mxu1  ;;  %v2138_v2 = vadd.f32 %v2137_v41, %v2136_v29 }
 0x1f7   :  { %v2201_v4 = vpop.f32.mrb[47].mxu1 }
 0x1f8   :  { %v3247_v5 = vadd.f32 %v2199_v42, %v2135_v62  ;;  %v2202_v7 = vadd.f32 %v2201_v4, %v2200_v0 }
 0x1fa   :  { %v3249_v8 = vadd.f32 %v2202_v7, %v2138_v2  ;;  %v2219_v9 = vpop.f32.mrb[48].mxu0 }
 0x1fb   :  { %v2220_v10 = vpop.f32.mrb[49].mxu0 }
 0x1fc   :  { %v2283_v11 = vpop.f32.mrb[48].mxu1  ;;  %v2221_v12 = vadd.f32 %v2220_v10, %v2219_v9  ;;  %v2222_v13 = vpop.f32.mrb[50].mxu0 }
 0x1fd   :  { %v2284_v14 = vpop.f32.mrb[49].mxu1  ;;  %v2223_v15 = vpop.f32.mrb[51].mxu0 }
 0x1fe   :  { %v1426_v17 = vadd.f32 %v2221_v12, %v3219_v20  ;;  %v2285_v19 = vadd.f32 %v2284_v14, %v2283_v11  ;;  %v2286_v21 = vpop.f32.mrb[50].mxu1  ;;  %v2224_v23 = vadd.f32 %v2223_v15, %v2222_v13 }
 0x1ff   :  { %v2287_v24 = vpop.f32.mrb[51].mxu1 }
 0x200   :  { %v1523_v25 = vadd.f32 %v2285_v19, %v1426_v17  ;;  %v1429_v26 = vadd.f32 %v2224_v23, %v3221_v22  ;;  %v2288_v27 = vadd.f32 %v2287_v24, %v2286_v21 }
 0x202   :  { %v1526_v31 = vadd.f32 %v2288_v27, %v1429_v26  ;;  %v2225_v32 = vpop.f32.mrb[52].mxu0 }
 0x203   :  { %v2226_v30 = vpop.f32.mrb[53].mxu0 }
 0x204   :  { %v2384_v35 = vpack.c.bf16 %v1526_v31, %v1523_v25  ;;  %v2289_v53 = vpop.f32.mrb[52].mxu1  ;;  %v2227_v58 = vadd.f32 %v2226_v30, %v2225_v32  ;;  %v2228_v59 = vpop.f32.mrb[54].mxu0 }
 0x205   :  { %v2290_v60 = vpop.f32.mrb[53].mxu1  ;;  %v2229_v61 = vpop.f32.mrb[55].mxu0 }
 0x206   :  { %v1434_v28 = vadd.f32 %v2227_v58, %v3223_v54  ;;  %v2291_v20 = vadd.f32 %v2290_v60, %v2289_v53  ;;  %v2292_v63 = vpop.f32.mrb[54].mxu1  ;;  %v2230_v33 = vadd.f32 %v2229_v61, %v2228_v59  ;;  %2385 = vmatpush3.bf16.msra.mxu0 %v2384_v35 }
 0x207   :  { %v2293_v34 = vpop.f32.mrb[55].mxu1  ;;  %2386 = vmatprep.subr.bf16.mxu0 %v2607_v40 }
 0x208   :  { %v1531_v22 = vadd.f32 %v2291_v20, %v1434_v28  ;;  %v1437_v36 = vadd.f32 %v2230_v33, %v3225_v57  ;;  %v2294_v37 = vadd.f32 %v2293_v34, %v2292_v63 }
 0x20a   :  { %v2231_v39 = vpop.f32.mrb[56].mxu0  ;;  %v1534_v50 = vadd.f32 %v2294_v37, %v1437_v36 }
 0x20b   :  { %v2232_v46 = vpop.f32.mrb[57].mxu0 }
 0x20c   :  { %v2295_v45 = vpop.f32.mrb[56].mxu1  ;;  %v2233_v47 = vadd.f32 %v2232_v46, %v2231_v39  ;;  %v2234_v62 = vpop.f32.mrb[58].mxu0  ;;  %v2387_v29 = vpack.c.bf16 %v1534_v50, %v1531_v22 }
 0x20d   :  { %v2296_v43 = vpop.f32.mrb[57].mxu1  ;;  %v2235_v54 = vpop.f32.mrb[59].mxu0 }
 0x20e   :  { %v1442_v41 = vadd.f32 %v2233_v47, %v3227_v44  ;;  %v2297_v42 = vadd.f32 %v2296_v43, %v2295_v45  ;;  %v2298_v0 = vpop.f32.mrb[58].mxu1  ;;  %v2236_v2 = vadd.f32 %v2235_v54, %v2234_v62  ;;  %2388 = vmatpush3.bf16.msra.mxu0 %v2387_v29 }
 0x20f   :  { %v2299_v4 = vpop.f32.mrb[59].mxu1  ;;  %2389 = vmatprep.subr.bf16.mxu0 %v2607_v40 }
 0x210   :  { %v1539_v7 = vadd.f32 %v2297_v42, %v1442_v41  ;;  %v1445_v57 = vadd.f32 %v2236_v2, %v3229_v55  ;;  %v2300_v9 = vadd.f32 %v2299_v4, %v2298_v0 }
 0x212   :  { %v1542_v10 = vadd.f32 %v2300_v9, %v1445_v57  ;;  %v2237_v11 = vpop.f32.mrb[60].mxu0 }
 0x213   :  { %v2238_v12 = vpop.f32.mrb[61].mxu0 }
 0x214   :  { %v2390_v13 = vpack.c.bf16 %v1542_v10, %v1539_v7  ;;  %v2301_v14 = vpop.f32.mrb[60].mxu1  ;;  %v2239_v15 = vadd.f32 %v2238_v12, %v2237_v11  ;;  %v2240_v17 = vpop.f32.mrb[62].mxu0 }
 0x215   :  { %v2302_v19 = vpop.f32.mrb[61].mxu1  ;;  %v2241_v44 = vpop.f32.mrb[63].mxu0 }
 0x216   :  { %v1450_v21 = vadd.f32 %v2239_v15, %v3231_v1  ;;  %v2303_v23 = vadd.f32 %v2302_v19, %v2301_v14  ;;  %v2304_v24 = vpop.f32.mrb[62].mxu1  ;;  %v2242_v25 = vadd.f32 %v2241_v44, %v2240_v17  ;;  %2391 = vmatpush3.bf16.msra.mxu0 %v2390_v13 }
 0x217   :  { %v2305_v26 = vpop.f32.mrb[63].mxu1  ;;  %2392 = vmatprep.subr.bf16.mxu0 %v2607_v40 }
 0x218   :  { %v1547_v55 = vadd.f32 %v2303_v23, %v1450_v21  ;;  %v1453_v27 = vadd.f32 %v2242_v25, %v3233_v3  ;;  %v2306_v31 = vadd.f32 %v2305_v26, %v2304_v24 }
 0x21a   :  { %v1550_v32 = vadd.f32 %v2306_v31, %v1453_v27  ;;  %v2243_v30 = vpop.f32.mrb[64].mxu0 }
 0x21b   :  { %v2244_v35 = vpop.f32.mrb[65].mxu0 }
 0x21c   :  { %v2393_v53 = vpack.c.bf16 %v1550_v32, %v1547_v55  ;;  %v2307_v58 = vpop.f32.mrb[64].mxu1  ;;  %v2245_v59 = vadd.f32 %v2244_v35, %v2243_v30  ;;  %v2246_v60 = vpop.f32.mrb[66].mxu0 }
 0x21d   :  { %v2308_v61 = vpop.f32.mrb[65].mxu1  ;;  %v2247_v1 = vpop.f32.mrb[67].mxu0 }
 0x21e   :  { %v1458_v28 = vadd.f32 %v2245_v59, %v3235_v16  ;;  %v2309_v20 = vadd.f32 %v2308_v61, %v2307_v58  ;;  %v2310_v63 = vpop.f32.mrb[66].mxu1  ;;  %v2248_v33 = vadd.f32 %v2247_v1, %v2246_v60  ;;  %2394 = vmatpush3.bf16.msra.mxu0 %v2393_v53 }
 0x21f   :  { %v2311_v34 = vpop.f32.mrb[67].mxu1  ;;  %2395 = vmatprep.subr.bf16.mxu0 %v2607_v40 }
 0x220   :  { %v1555_v3 = vadd.f32 %v2309_v20, %v1458_v28  ;;  %v1461_v22 = vadd.f32 %v2248_v33, %v3237_v18  ;;  %v2312_v36 = vadd.f32 %v2311_v34, %v2310_v63  ;;  %v2609_v63 = vmov 0.2  }
 0x221   :  { %v1707_v33 = vsel %vm1637_vm0, 1.0, %v2609_v63  ;;  %v1810_v63 = vstv %s1809_s22 }
 0x222   :  { %v1558_v37 = vadd.f32 %v2312_v36, %v1461_v22  ;;  %v2249_v39 = vpop.f32.mrb[68].mxu0 }
 0x223   :  { %v2250_v50 = vpop.f32.mrb[69].mxu0 }
 0x224   :  { %v2396_v46 = vpack.c.bf16 %v1558_v37, %v1555_v3  ;;  %v2313_v45 = vpop.f32.mrb[68].mxu1  ;;  %v2251_v47 = vadd.f32 %v2250_v50, %v2249_v39  ;;  %v2252_v62 = vpop.f32.mrb[70].mxu0 }
 0x225   :  { %v2314_v29 = vpop.f32.mrb[69].mxu1  ;;  %v2253_v16 = vpop.f32.mrb[71].mxu0 }
 0x226   :  { %v1466_v43 = vadd.f32 %v2251_v47, %v3239_v38  ;;  %v2315_v54 = vadd.f32 %v2314_v29, %v2313_v45  ;;  %v2316_v41 = vpop.f32.mrb[70].mxu1  ;;  %v2254_v42 = vadd.f32 %v2253_v16, %v2252_v62  ;;  %2397 = vmatpush3.bf16.msra.mxu0 %v2396_v46 }
 0x227   :  { %v2317_v0 = vpop.f32.mrb[71].mxu1  ;;  %2398 = vmatprep.subr.bf16.mxu0 %v2607_v40 }
 0x228   :  { %v1563_v18 = vadd.f32 %v2315_v54, %v1466_v43  ;;  %v1469_v2 = vadd.f32 %v2254_v42, %v3241_v56  ;;  %v2318_v4 = vadd.f32 %v2317_v0, %v2316_v41 }
 0x22a   :  { %v1566_v7 = vadd.f32 %v2318_v4, %v1469_v2  ;;  %v2255_v57 = vpop.f32.mrb[72].mxu0 }
 0x22b   :  { %v2256_v9 = vpop.f32.mrb[73].mxu0 }
 0x22c   :  { %v2399_v10 = vpack.c.bf16 %v1566_v7, %v1563_v18  ;;  %v2319_v11 = vpop.f32.mrb[72].mxu1  ;;  %v2257_v12 = vadd.f32 %v2256_v9, %v2255_v57  ;;  %v2258_v13 = vpop.f32.mrb[74].mxu0 }
 0x22d   :  { %v2320_v14 = vpop.f32.mrb[73].mxu1  ;;  %v2259_v38 = vpop.f32.mrb[75].mxu0 }
 0x22e   :  { %v1474_v15 = vadd.f32 %v2257_v12, %v3243_v52  ;;  %v2321_v17 = vadd.f32 %v2320_v14, %v2319_v11  ;;  %v2322_v19 = vpop.f32.mrb[74].mxu1  ;;  %v2260_v44 = vadd.f32 %v2259_v38, %v2258_v13  ;;  %2400 = vmatpush3.bf16.msra.mxu0 %v2399_v10 }
 0x22f   :  { %v2323_v21 = vpop.f32.mrb[75].mxu1  ;;  %2401 = vmatprep.subr.bf16.mxu0 %v2607_v40 }
 0x230   :  { %v1571_v56 = vadd.f32 %v2321_v17, %v1474_v15  ;;  %v1477_v23 = vadd.f32 %v2260_v44, %v3245_v49  ;;  %v2324_v24 = vadd.f32 %v2323_v21, %v2322_v19 }
 0x232   :  { %v1574_v25 = vadd.f32 %v2324_v24, %v1477_v23  ;;  %v2261_v26 = vpop.f32.mrb[76].mxu0 }
 0x233   :  { %v2262_v55 = vpop.f32.mrb[77].mxu0 }
 0x234   :  { %v2402_v27 = vpack.c.bf16 %v1574_v25, %v1571_v56  ;;  %v2325_v31 = vpop.f32.mrb[76].mxu1  ;;  %v2263_v32 = vadd.f32 %v2262_v55, %v2261_v26  ;;  %v2264_v30 = vpop.f32.mrb[78].mxu0 }
 0x235   :  { %v2326_v35 = vpop.f32.mrb[77].mxu1  ;;  %v2265_v52 = vpop.f32.mrb[79].mxu0 }
 0x236   :  { %v1482_v53 = vadd.f32 %v2263_v32, %v3247_v5  ;;  %v2327_v58 = vadd.f32 %v2326_v35, %v2325_v31  ;;  %v2328_v59 = vpop.f32.mrb[78].mxu1  ;;  %v2266_v60 = vadd.f32 %v2265_v52, %v2264_v30  ;;  %2403 = vmatpush3.bf16.msra.mxu0 %v2402_v27  ;;  %v1708_v5 = vmul.f32 %v3206_v51, %v1707_v33 }
 0x237   :  { %v2329_v61 = vpop.f32.mrb[79].mxu1  ;;  %2404 = vmatprep.subr.bf16.mxu0 %v2607_v40  ;;  %v1654_v40 = vstv %s1896_s4 }
 0x238   :  { %v1579_v49 = vadd.f32 %v2327_v58, %v1482_v53  ;;  %v1485_v1 = vadd.f32 %v2266_v60, %v3249_v8  ;;  %v2330_v28 = vadd.f32 %v2329_v61, %v2328_v59  ;;  %v1653_v8 = vpop.xlane.xlu0 %1652 }
 0x239   :  { %v1655_v39 = vadd.f32 %v1654_v40, %v1653_v8 }
 0x23a   :  { %v1582_v20 = vadd.f32 %v2330_v28, %v1485_v1 }
 0x23b   :  { %v1661_v46 = vsub.f32 0.0, %v1655_v39 }
 0x23c   :  { %v2405_v34 = vpack.c.bf16 %v1582_v20, %v1579_v49 }
 0x23d   :  { %v1663_v51 = vand.u32 2147483647, %v1661_v46  ;;  %v1662_v17 = vmax.f32 %v1661_v46, 0.0 }
 0x23e   :  { %2406 = vmatpush3.bf16.msra.mxu0 %v2405_v34 }
 0x23f   :  { %v1664_v62 = vsub.f32 0.0, %v1663_v51 }
 0x241   :  { %2381 = vmatmul.mubr.f32.vlgmr.msra.gmra.mrb[80].mxu0 %v1708_v5  ;;  %v1665_v16 = vmul.f32 1.442695, %v1664_v62 }
 0x243   :  { %v1659_v48 = vpop.xlane.xlu1 %1658 }
 0x244   :  { %v1660_v50 = vadd.f32 %v1659_v48, %v1654_v40 }
 0x246   :  { %v1685_v45 = vand.u32 2147483647, %v1660_v50  ;;  %v1684_v38 = vmax.f32 %v1660_v50, 0.0 }
 0x248   :  { %v1686_v47 = vsub.f32 0.0, %v1685_v45 }
 0x24a   :  { %v1687_v29 = vmul.f32 1.442695, %v1686_v47 }
 0x24c   :  { %2485 = vpow2.f32 %v1687_v29 }
 0x24d   :  { %2487 = vpow2.f32 %v1665_v16 }
 0x256   :  { %v2486_v43 = vpop.eup %2485 }
 0x257   :  { %v2488_v54 = vpop.eup %2487  ;;  %v1689_v41 = vadd.f32 1.0, %v2486_v43  ;;  %v1692_v6 = vmul.f32 -0.5, %v2486_v43  ;;  %v1695_v7 = vand.u32 2147483647, %v2486_v43 }
 0x258   :  { %v1667_v42 = vadd.f32 1.0, %v2488_v54  ;;  %v1670_v0 = vmul.f32 -0.5, %v2488_v54  ;;  %v1673_v10 = vand.u32 2147483647, %v2488_v54 }
 0x259   :  { %2489 = vlog2.f32 %v1689_v41  ;;  %v1693_v2 = vadd.f32 1.0, %v1692_v6  ;;  %vm1696_vm5 = vcmp.lt.f32.partialorder %v1695_v7, 0.0004427343 }
 0x25a   :  { %2491 = vlog2.f32 %v1667_v42  ;;  %v1671_v57 = vadd.f32 1.0, %v1670_v0  ;;  %vm1674_vm6 = vcmp.lt.f32.partialorder %v1673_v10, 0.0004427343 }
 0x25b   :  { %v1694_v12 = vmul.f32 %v2486_v43, %v1693_v2 }
 0x25c   :  { %v1672_v13 = vmul.f32 %v2488_v54, %v1671_v57 }
 0x263   :  { %v2490_v18 = vpop.eup %2489 }
 0x264   :  { %v2492_v4 = vpop.eup %2491  ;;  %v1691_v9 = vmul.f32 0.6931472, %v2490_v18 }
 0x265   :  { %v1669_v11 = vmul.f32 0.6931472, %v2492_v4 }
 0x266   :  { %v1697_v14 = vsel %vm1696_vm5, %v1694_v12, %v1691_v9 }
 0x267   :  { %v1675_v15 = vsel %vm1674_vm6, %v1672_v13, %v1669_v11  ;;  %v1698_v19 = vadd.f32 %v1697_v14, %v1684_v38 }
 0x268   :  { %v1676_v44 = vadd.f32 %v1675_v15, %v1662_v17 }
 0x269   :  { %v1699_v21 = vsel %vm1650_vm1, %v1698_v19, 0.0 }
 0x26a   :  { %v1677_v56 = vsel %vm1650_vm1, %v1676_v44, 0.0  ;;  %v1700_v23 = vrot.slane %v1699_v21, 4 }
 0x26b   :  { %v1678_v24 = vrot.slane %v1677_v56, 4 }
 0x26c   :  { %v1701_v25 = vadd.f32 %v1700_v23, %v1699_v21 }
 0x26d   :  { %v1679_v26 = vadd.f32 %v1678_v24, %v1677_v56 }
 0x26e   :  { %v1702_v55 = vrot.slane %v1701_v25, 2 }
 0x26f   :  { %v1680_v27 = vrot.slane %v1679_v26, 2 }
 0x270   :  { %v1703_v31 = vadd.f32 %v1702_v55, %v1701_v25 }
 0x271   :  { %v1681_v32 = vadd.f32 %v1680_v27, %v1679_v26 }
 0x272   :  { %v1704_v53 = vrot.slane %v1703_v31, 1 }
 0x273   :  { %v1682_v59 = vrot.slane %v1681_v32, 1 }
 0x274   :  { %v1705_v61 = vadd.f32 %v1704_v53, %v1703_v31 }
 0x275   :  { %v1683_v1 = vadd.f32 %v1682_v59, %v1681_v32 }
 0x277   :  { %v1706_v20 = vadd.f32 %v1705_v61, %v1683_v1 }
 0x279   :  { %v1806_v34 = vmul.f32 0.5, %v1706_v20 }
 0x314   :  { %v1791_v3 = vpop.f32.mrb[80].mxu0 }
 0x315   :  { %v1795_v22 = vmul.f32 %v1791_v3, %v1708_v5  ;;  %v2382_v36 = vpop.f32.mrb[81].mxu0 }
 0x317   :  { %v1796_v37 = vsel %vm1650_vm1, %v1795_v22, 0.0 }
 0x318   :  { %1797 = vadd.xlane.f32.xlu0 %v1796_v37 }
 0x3a5   :  { %v1798_v30 = vpop.xlane.xlu0 %1797 }
 0x3a6   :  { %v1799_v35 = vsel %vm1650_vm1, %v1798_v30, 0.0 }
 0x3a7   :  { %v1800_v52 = vrot.slane %v1799_v35, 4 }
 0x3a9   :  { %v1801_v58 = vadd.f32 %v1800_v52, %v1799_v35 }
 0x3ab   :  { %v1802_v60 = vrot.slane %v1801_v58, 2 }
 0x3ad   :  { %v1803_v49 = vadd.f32 %v1802_v60, %v1801_v58 }
 0x3af   :  { %v1804_v28 = vrot.slane %v1803_v49, 1 }
 0x3b1   :  { %v1805_v33 = vadd.f32 %v1804_v28, %v1803_v49 }
 0x3b3   :  { %v1811_v5 = vmul.f32 %v1810_v63, %v1805_v33 }
 0x3b5   :  { %v1812_v3 = vadd.f32 %v1811_v5, %v1806_v34 }
 0x3b7   :  { %1814 = vst.msk [vmem:[#allocation13] sm:$0x1] %vm95_vm4, %v1812_v3 }
 0x3b8   :  { %2580 = shalt.err (!%p2577_p3)
}
 0x3b9   :  { %s2581_s29 = scalar_lea.hbm %s3304_s6, 16 }
 0x3ba   :  { %p2582_p4 = scmp.ne.s32.totalorder %s3304_s6, %s2581_s29  ;;  %p2585_p5 = scmp.lt.u32.totalorder %s2581_s29, %s3304_s6 }
 0x3bc   :  { %p2587_p6 = pnand %p2585_p5, %p2582_p4 }
 0x3be   :  { %2590 = shalt.err (!%p2587_p6)
}
 0x3bf   :  { %1824 = dma.vmem_to_hbm [thread:$0]  %s1822_s25, 16, %s3304_s6, [#allocation7]  }
 0x3c0   :  { %2597 = dma.done.wait [#allocation7], 16  }
 0x3c1   :  { %2598 = vsyncadd [#allocation7], 4294967280 }
 0x3c2   :  { %1828 = vsyncpa [#allocation6], 1 }
 0x3c3   :  { %1829 = vsyncpa [#allocation11], 1 }
 0x3c4   :  { %1830 = vsyncpa [#allocation7], 1 }
 0x3c5   :  { %1831 = vsyncpa [#allocation8], 1 }

</bundles_post_ra>
